<compile_context>
chip_gen: v7x
topology: tpu7x:2x2x1
jax: 0.10.0
libtpu: 0.0.40
codegen_flags: <defaults>
</compile_context>

<pallas_src>
import functools

import jax
import jax.numpy as jnp
from jax.experimental import pallas as pl
from jax.experimental.pallas import tpu as pltpu

CHANNELS = 1
IMG_SIZE = 28
LATENT_DIM = 100
OUT_DIM = CHANNELS * IMG_SIZE * IMG_SIZE       # 784

# Lane-aligned (multiple-of-128) padded feature dims.
LATENT_PAD = 128                               # 100 -> 128
OUT_PAD = 896                                  # 784 -> 896 = 7 * 128
H1, H2, H3 = 128, 256, 512

BN_EPS = 1e-5
LRELU_SLOPE = 0.2

# bf16 matmul LHS packs 16 rows per sublane group; pad batch only to that.
MIN_BATCH_TILE = 16
# Batch tile for the gridded (large-batch / megacore) two-pass-BN path.
GRID_BATCH_TILE = 256


def _round_up(n, m):
    return ((n + m - 1) // m) * m


def _leaky_relu(x):
    # mul + max (2 VPU ops) instead of cmp + mul + select.
    return jnp.maximum(x, LRELU_SLOPE * x)


def _vmem_cap_bytes():
    """Cap for the whole-batch-resident single-pass path, from real HW info."""
    try:
        phys = int(pltpu.get_tpu_info().vmem_capacity_bytes)
    except Exception:
        phys = 64 << 20                        # conservative (v7x-sized) fallback
    return max(16 << 20, min(phys - (24 << 20), 100 << 20))


# ---------------------------------------------------------------------------
# Single-pass kernel: whole (padded) batch resident, full-batch BN in-kernel.
# ---------------------------------------------------------------------------

def _bn_train(x, gamma, beta, row_mask, inv_n):
    """Training-mode BatchNorm1d over REAL rows only (biased variance)."""
    if row_mask is None:
        mean = jnp.mean(x, axis=0, keepdims=True)
        xm = x - mean
        var = jnp.mean(xm * xm, axis=0, keepdims=True)
    else:
        xs = jnp.where(row_mask, x, 0.0)
        mean = jnp.sum(xs, axis=0, keepdims=True) * inv_n
        xm = x - mean
        xv = jnp.where(row_mask, xm, 0.0)
        var = jnp.sum(xv * xv, axis=0, keepdims=True) * inv_n
    return gamma * (xm * jax.lax.rsqrt(var + BN_EPS)) + beta


def _make_single_pass_kernel(b_real, b_pad, out_dtype):
    inv_n = 1.0 / float(b_real)
    needs_mask = b_pad != b_real

    def kernel(z_ref,
               w1_ref, b1_ref,
               w2_ref, g2_ref, be2_ref,
               w3_ref, g3_ref, be3_ref,
               w4_ref, b4_ref,
               o_ref):
        if needs_mask:
            row_mask = (jax.lax.broadcasted_iota(jnp.int32, (b_pad, 1), 0)
                        < b_real)
        else:
            row_mask = None

        # Linear(100->128) + LeakyReLU (z already bf16, K zero-padded)
        h = _leaky_relu(
            jnp.dot(z_ref[...], w1_ref[...],
                    preferred_element_type=jnp.float32) + b1_ref[...])

        # Linear(128->256) [bias cancelled by BN] + BatchNorm + LeakyReLU
        h = jnp.dot(h.astype(jnp.bfloat16), w2_ref[...],
                    preferred_element_type=jnp.float32)
        h = _leaky_relu(_bn_train(h, g2_ref[...], be2_ref[...], row_mask, inv_n))

        # Linear(256->512) [bias cancelled by BN] + BatchNorm + LeakyReLU
        h = jnp.dot(h.astype(jnp.bfloat16), w3_ref[...],
                    preferred_element_type=jnp.float32)
        h = _leaky_relu(_bn_train(h, g3_ref[...], be3_ref[...], row_mask, inv_n))

        # Linear(512->784 [padded 896]) + Tanh
        h = jnp.dot(h.astype(jnp.bfloat16), w4_ref[...],
                    preferred_element_type=jnp.float32) + b4_ref[...]
        o_ref[...] = jnp.tanh(h).astype(out_dtype)

    return kernel


def _forward_single(z, p, out_dtype):
    b_real = z.shape[0]
    b_pad = _round_up(max(b_real, MIN_BATCH_TILE), MIN_BATCH_TILE)

    z_pad = jnp.pad(
        z.astype(jnp.float32),
        ((0, b_pad - b_real), (0, LATENT_PAD - LATENT_DIM))).astype(jnp.bfloat16)

    args = (z_pad,
            p["w1"], p["b1"],
            p["w2"], p["g2"], p["be2"],
            p["w3"], p["g3"], p["be3"],
            p["w4"], p["b4"])

    out_itemsize = jnp.dtype(out_dtype).itemsize
    weight_bytes = sum(int(a.size) * a.dtype.itemsize for a in args[1:])
    io_bytes = int(z_pad.size) * 2 + b_pad * OUT_PAD * out_itemsize
    act_bytes = b_pad * (H1 + H2 + H3 + OUT_PAD) * 4
    vmem_limit = int(min(_vmem_cap_bytes(),
                         max(16 << 20,
                             int(1.5 * (weight_bytes + io_bytes + act_bytes))
                             + (4 << 20))))

    cost = pl.CostEstimate(
        flops=int(2 * b_pad * (LATENT_PAD * H1 + H1 * H2 + H2 * H3
                               + H3 * OUT_PAD)),
        transcendentals=int(b_pad * OUT_PAD + H2 + H3),   # tanh + per-feature rsqrt
        bytes_accessed=int(weight_bytes + io_bytes),
    )

    vmem_spec = pl.BlockSpec(memory_space=pltpu.MemorySpace.VMEM)
    flat = pl.pallas_call(
        _make_single_pass_kernel(b_real, b_pad, out_dtype),
        out_shape=jax.ShapeDtypeStruct((b_pad, OUT_PAD), out_dtype),
        in_specs=[vmem_spec] * len(args),
        out_specs=vmem_spec,
        compiler_params=pltpu.CompilerParams(vmem_limit_bytes=vmem_limit),
        cost_estimate=cost,
    )(*args)
    return flat[:b_real, :OUT_DIM]


# ---------------------------------------------------------------------------
# Gridded path: batch-tiled, two-pass BatchNorm (partial stats -> combine ->
# apply).  dimension_semantics=("parallel",) lets both v7x TCs take tiles and
# keeps VMEM bounded independent of batch size.
# ---------------------------------------------------------------------------

def _stage1_kernel(z_ref, w1_ref, b1_ref, w2_ref,
                   h2_ref, sum_ref, ssq_ref, *, tb, b_real):
    h1 = _leaky_relu(
        jnp.dot(z_ref[...], w1_ref[...],
                preferred_element_type=jnp.float32) + b1_ref[...])
    h2 = jnp.dot(h1.astype(jnp.bfloat16), w2_ref[...],
                 preferred_element_type=jnp.float32)
    h2_ref[...] = h2
    row = (pl.program_id(0) * tb
           + jax.lax.broadcasted_iota(jnp.int32, (tb, 1), 0))
    h2m = jnp.where(row < b_real, h2, 0.0)
    sum_ref[...] = jnp.sum(h2m, axis=0, keepdims=True)[None]
    ssq_ref[...] = jnp.sum(h2m * h2m, axis=0, keepdims=True)[None]


def _stage2_kernel(h2_ref, s_ref, t_ref, w3_ref,
                   h3_ref, sum_ref, ssq_ref, *, tb, b_real):
    h = _leaky_relu(h2_ref[...] * s_ref[...] + t_ref[...])
    h3 = jnp.dot(h.astype(jnp.bfloat16), w3_ref[...],
                 preferred_element_type=jnp.float32)
    h3_ref[...] = h3
    row = (pl.program_id(0) * tb
           + jax.lax.broadcasted_iota(jnp.int32, (tb, 1), 0))
    h3m = jnp.where(row < b_real, h3, 0.0)
    sum_ref[...] = jnp.sum(h3m, axis=0, keepdims=True)[None]
    ssq_ref[...] = jnp.sum(h3m * h3m, axis=0, keepdims=True)[None]


def _stage3_kernel(h3_ref, s_ref, t_ref, w4_ref, b4_ref, o_ref, *, out_dtype):
    h = _leaky_relu(h3_ref[...] * s_ref[...] + t_ref[...])
    o = jnp.dot(h.astype(jnp.bfloat16), w4_ref[...],
                preferred_element_type=jnp.float32) + b4_ref[...]
    o_ref[...] = jnp.tanh(o).astype(out_dtype)


def _bn_scale_shift(sums, ssqs, gamma, beta, n):
    """Combine per-tile partial sums into BN scale/shift (tiny JAX ops)."""
    s = jnp.sum(sums, axis=0)                      # (1, H)
    q = jnp.sum(ssqs, axis=0)                      # (1, H)
    mean = s / n
    var = jnp.maximum(q / n - mean * mean, 0.0)    # biased, training-mode BN
    scale = gamma * jax.lax.rsqrt(var + BN_EPS)
    shift = beta - mean * scale
    return scale, shift


def _forward_gridded(z, p, out_dtype):
    b_real = z.shape[0]
    tb = GRID_BATCH_TILE
    b_pad = _round_up(max(b_real, tb), tb)
    n_tiles = b_pad // tb

    z_pad = jnp.pad(
        z.astype(jnp.float32),
        ((0, b_pad - b_real), (0, LATENT_PAD - LATENT_DIM))).astype(jnp.bfloat16)

    tile_map = lambda i: (i, 0)
    const_map = lambda i: (0, 0)
    stat_spec = lambda h: pl.BlockSpec((1, 1, h), lambda i: (i, 0, 0))
    dimsem = pltpu.CompilerParams(dimension_semantics=("parallel",))

    # -- stage 1: z -> pre-BN h2, partial BN2 stats -------------------------
    h2, s2, q2 = pl.pallas_call(
        functools.partial(_stage1_kernel, tb=tb, b_real=b_real),
        grid=(n_tiles,),
        in_specs=[pl.BlockSpec((tb, LATENT_PAD), tile_map),
                  pl.BlockSpec((LATENT_PAD, H1), const_map),
                  pl.BlockSpec((1, H1), const_map),
                  pl.BlockSpec((H1, H2), const_map)],
        out_specs=(pl.BlockSpec((tb, H2), tile_map),
                   stat_spec(H2), stat_spec(H2)),
        out_shape=(jax.ShapeDtypeStruct((b_pad, H2), jnp.float32),
                   jax.ShapeDtypeStruct((n_tiles, 1, H2), jnp.float32),
                   jax.ShapeDtypeStruct((n_tiles, 1, H2), jnp.float32)),
        compiler_params=dimsem,
    )(z_pad, p["w1"], p["b1"], p["w2"])

    scale2, shift2 = _bn_scale_shift(s2, q2, p["g2"], p["be2"], b_real)

    # -- stage 2: BN2 apply + LReLU -> pre-BN h3, partial BN3 stats ---------
    h3, s3, q3 = pl.pallas_call(
        functools.partial(_stage2_kernel, tb=tb, b_real=b_real),
        grid=(n_tiles,),
        in_specs=[pl.BlockSpec((tb, H2), tile_map),
                  pl.BlockSpec((1, H2), const_map),
                  pl.BlockSpec((1, H2), const_map),
                  pl.BlockSpec((H2, H3), const_map)],
        out_specs=(pl.BlockSpec((tb, H3), tile_map),
                   stat_spec(H3), stat_spec(H3)),
        out_shape=(jax.ShapeDtypeStruct((b_pad, H3), jnp.float32),
                   jax.ShapeDtypeStruct((n_tiles, 1, H3), jnp.float32),
                   jax.ShapeDtypeStruct((n_tiles, 1, H3), jnp.float32)),
        compiler_params=dimsem,
    )(h2, scale2, shift2, p["w3"])

    scale3, shift3 = _bn_scale_shift(s3, q3, p["g3"], p["be3"], b_real)

    # -- stage 3: BN3 apply + LReLU + Linear + Tanh --------------------------
    out = pl.pallas_call(
        functools.partial(_stage3_kernel, out_dtype=out_dtype),
        grid=(n_tiles,),
        in_specs=[pl.BlockSpec((tb, H3), tile_map),
                  pl.BlockSpec((1, H3), const_map),
                  pl.BlockSpec((1, H3), const_map),
                  pl.BlockSpec((H3, OUT_PAD), const_map),
                  pl.BlockSpec((1, OUT_PAD), const_map)],
        out_specs=pl.BlockSpec((tb, OUT_PAD), tile_map),
        out_shape=jax.ShapeDtypeStruct((b_pad, OUT_PAD), out_dtype),
        compiler_params=dimsem,
    )(h3, scale3, shift3, p["w4"], p["b4"])

    return out[:b_real, :OUT_DIM]


# ---------------------------------------------------------------------------
# Parameters & public forward
# ---------------------------------------------------------------------------

def init_params(key):
    """Deterministic synthetic parameters at the PyTorch module's shapes."""
    dims = [(LATENT_DIM, H1), (H1, H2), (H2, H3), (H3, OUT_DIM)]
    params = {}
    keys = jax.random.split(key, len(dims) * 2)
    for i, (fan_in, fan_out) in enumerate(dims):
        bound = 1.0 / float(fan_in) ** 0.5
        params[f"w{i + 1}"] = jax.random.uniform(
            keys[2 * i], (fan_in, fan_out), jnp.float32, -bound, bound)
        params[f"b{i + 1}"] = jax.random.uniform(
            keys[2 * i + 1], (1, fan_out), jnp.float32, -bound, bound)
    params["g2"] = jnp.ones((1, H2), jnp.float32)
    params["be2"] = jnp.zeros((1, H2), jnp.float32)
    params["g3"] = jnp.ones((1, H3), jnp.float32)
    params["be3"] = jnp.zeros((1, H3), jnp.float32)
    return params


def prepare_params(params):
    """Pad to lane-aligned shapes, cast matmul weights to bf16, drop b2/b3
    (exactly cancelled by training-mode BatchNorm's mean subtraction)."""
    def pad_to(a, shape):
        return jnp.pad(a, [(0, t - s) for s, t in zip(a.shape, shape)])

    return {
        "w1": pad_to(params["w1"], (LATENT_PAD, H1)).astype(jnp.bfloat16),
        "b1": params["b1"],
        "w2": params["w2"].astype(jnp.bfloat16),
        "g2": params["g2"], "be2": params["be2"],
        "w3": params["w3"].astype(jnp.bfloat16),
        "g3": params["g3"], "be3": params["be3"],
        "w4": pad_to(params["w4"], (H3, OUT_PAD)).astype(jnp.bfloat16),
        "b4": pad_to(params["b4"], (1, OUT_PAD)),
    }


def generator_forward(z, padded_params, reshape_to_nchw=True,
                      out_dtype=jnp.float32, mode="auto"):
    b_real = z.shape[0]

    if mode == "auto":
        # Single-pass while the whole-batch-resident footprint fits VMEM
        # (per-chip cap from get_tpu_info); otherwise batch-gridded two-pass.
        p = padded_params
        weight_bytes = sum(int(a.size) * a.dtype.itemsize for a in p.values())
        row_bytes = (LATENT_PAD * 2
                     + OUT_PAD * jnp.dtype(out_dtype).itemsize
                     + 4 * (H1 + H2 + H3 + OUT_PAD))
        budget = _vmem_cap_bytes() - weight_bytes - (6 << 20)
        max_rows = max(MIN_BATCH_TILE, budget // int(1.5 * row_bytes))
        mode = "single" if b_real <= max_rows else "gridded"

    if mode == "single":
        flat = _forward_single(z, padded_params, out_dtype)
    else:
        flat = _forward_gridded(z, padded_params, out_dtype)

    if reshape_to_nchw:
        return flat.reshape(b_real, CHANNELS, IMG_SIZE, IMG_SIZE)
    return flat


if __name__ == "__main__":
    key = jax.random.PRNGKey(0)
    k_params, k_z, k_z2 = jax.random.split(key, 3)
    params = init_params(k_params)
    padded_params = prepare_params(params)

    # Small batch -> single-pass path (batch padded only 8 -> 16).
    B = 8
    z = jax.random.normal(k_z, (B, LATENT_DIM), jnp.float32)
    img = generator_forward(z, padded_params)
    jax.block_until_ready(img)
    assert img.shape == (B, CHANNELS, IMG_SIZE, IMG_SIZE)
    assert img.dtype == jnp.float32
    assert bool(jnp.all(jnp.isfinite(img)))

    # Exercise the batch-gridded two-pass-BN path (with a masked last tile)
    # and cross-check it against the single-pass path.
    B2 = 300
    z2 = jax.random.normal(k_z2, (B2, LATENT_DIM), jnp.float32)
    out_grid = generator_forward(z2, padded_params, reshape_to_nchw=False,
                                 mode="gridded")
    out_single = generator_forward(z2, padded_params, reshape_to_nchw=False,
                                   mode="single")
    jax.block_until_ready((out_grid, out_single))
    assert out_grid.shape == (B2, OUT_DIM)
    assert bool(jnp.all(jnp.isfinite(out_grid)))
    max_err = float(jnp.max(jnp.abs(out_grid - out_single)))
    assert max_err < 2e-2, f"path mismatch: {max_err}"

    print("KERNEL_OK")
</pallas_src>

<mosaic_0001>
module attributes {stable_mosaic.version = 11 : i64} {
  func.func @kernel(%arg0: memref<16x128xbf16, #tpu.memory_space<vmem>>, %arg1: memref<128x128xbf16, #tpu.memory_space<vmem>>, %arg2: memref<1x128xf32, #tpu.memory_space<vmem>>, %arg3: memref<128x256xbf16, #tpu.memory_space<vmem>>, %arg4: memref<1x256xf32, #tpu.memory_space<vmem>>, %arg5: memref<1x256xf32, #tpu.memory_space<vmem>>, %arg6: memref<256x512xbf16, #tpu.memory_space<vmem>>, %arg7: memref<1x512xf32, #tpu.memory_space<vmem>>, %arg8: memref<1x512xf32, #tpu.memory_space<vmem>>, %arg9: memref<512x896xbf16, #tpu.memory_space<vmem>>, %arg10: memref<1x896xf32, #tpu.memory_space<vmem>>, %arg11: memref<16x896xf32, #tpu.memory_space<vmem>>) attributes {dimension_semantics = [], scalar_prefetch = 0 : i64, scratch_operands = 0 : i64, tpu.core_type = #tpu.core_type<tc>} {
    %0 = tpu.iota {dimensions = array<i32: 0>} : vector<16x1xi32>
    %c8_i32 = arith.constant 8 : i32
    %1 = vector.broadcast %c8_i32 : i32 to vector<16x1xi32>
    %2 = arith.cmpi slt, %0, %1 : vector<16x1xi32>
    %c0 = arith.constant 0 : index
    %c0_0 = arith.constant 0 : index
    %3 = vector.load %arg0[%c0, %c0_0] : memref<16x128xbf16, #tpu.memory_space<vmem>>, vector<16x128xbf16>
    %c0_1 = arith.constant 0 : index
    %c0_2 = arith.constant 0 : index
    %4 = vector.load %arg1[%c0_1, %c0_2] : memref<128x128xbf16, #tpu.memory_space<vmem>>, vector<128x128xbf16>
    %cst = arith.constant dense<0.000000e+00> : vector<16x128xf32>
    %5 = tpu.matmul %3, %4, %cst {dimension_numbers = #tpu.dot_dimension_numbers<[1], [0], [0], [1], [0, 0, 1, 1], [], []>} : vector<16x128xbf16>, vector<128x128xbf16>, vector<16x128xf32> -> vector<16x128xf32>
    %c0_3 = arith.constant 0 : index
    %c0_4 = arith.constant 0 : index
    %6 = vector.load %arg2[%c0_3, %c0_4] : memref<1x128xf32, #tpu.memory_space<vmem>>, vector<1x128xf32>
    %7 = vector.broadcast %6 : vector<1x128xf32> to vector<16x128xf32>
    %8 = arith.addf %5, %7 : vector<16x128xf32>
    %cst_5 = arith.constant 2.000000e-01 : f32
    %9 = vector.broadcast %cst_5 : f32 to vector<16x128xf32>
    %10 = arith.mulf %9, %8 : vector<16x128xf32>
    %11 = arith.maximumf %8, %10 : vector<16x128xf32>
    %12 = arith.truncf %11 : vector<16x128xf32> to vector<16x128xbf16>
    %c0_6 = arith.constant 0 : index
    %c0_7 = arith.constant 0 : index
    %13 = vector.load %arg3[%c0_6, %c0_7] : memref<128x256xbf16, #tpu.memory_space<vmem>>, vector<128x256xbf16>
    %cst_8 = arith.constant dense<0.000000e+00> : vector<16x256xf32>
    %14 = tpu.matmul %12, %13, %cst_8 {dimension_numbers = #tpu.dot_dimension_numbers<[1], [0], [0], [1], [0, 0, 1, 1], [], []>} : vector<16x128xbf16>, vector<128x256xbf16>, vector<16x256xf32> -> vector<16x256xf32>
    %c0_9 = arith.constant 0 : index
    %c0_10 = arith.constant 0 : index
    %15 = vector.load %arg4[%c0_9, %c0_10] : memref<1x256xf32, #tpu.memory_space<vmem>>, vector<1x256xf32>
    %c0_11 = arith.constant 0 : index
    %c0_12 = arith.constant 0 : index
    %16 = vector.load %arg5[%c0_11, %c0_12] : memref<1x256xf32, #tpu.memory_space<vmem>>, vector<1x256xf32>
    %cst_13 = arith.constant 0.000000e+00 : f32
    %17 = vector.shape_cast %2 : vector<16x1xi1> to vector<16x1xi1>
    %18 = vector.broadcast %17 : vector<16x1xi1> to vector<16x256xi1>
    %19 = vector.broadcast %cst_13 : f32 to vector<16x256xf32>
    %20 = arith.select %18, %14, %19 : vector<16x256xi1>, vector<16x256xf32>
    %cst_14 = arith.constant dense<0.000000e+00> : vector<256xf32>
    %21 = vector.multi_reduction <add>, %20, %cst_14 [0] : vector<16x256xf32> to vector<256xf32>
    %22 = vector.shape_cast %21 : vector<256xf32> to vector<1x256xf32>
    %cst_15 = arith.constant 1.250000e-01 : f32
    %23 = vector.broadcast %cst_15 : f32 to vector<1x256xf32>
    %24 = arith.mulf %22, %23 : vector<1x256xf32>
    %25 = vector.broadcast %24 : vector<1x256xf32> to vector<16x256xf32>
    %26 = arith.subf %14, %25 : vector<16x256xf32>
    %cst_16 = arith.constant 0.000000e+00 : f32
    %27 = vector.shape_cast %2 : vector<16x1xi1> to vector<16x1xi1>
    %28 = vector.broadcast %27 : vector<16x1xi1> to vector<16x256xi1>
    %29 = vector.broadcast %cst_16 : f32 to vector<16x256xf32>
    %30 = arith.select %28, %26, %29 : vector<16x256xi1>, vector<16x256xf32>
    %31 = arith.mulf %30, %30 : vector<16x256xf32>
    %cst_17 = arith.constant dense<0.000000e+00> : vector<256xf32>
    %32 = vector.multi_reduction <add>, %31, %cst_17 [0] : vector<16x256xf32> to vector<256xf32>
    %33 = vector.shape_cast %32 : vector<256xf32> to vector<1x256xf32>
    %cst_18 = arith.constant 1.250000e-01 : f32
    %34 = vector.broadcast %cst_18 : f32 to vector<1x256xf32>
    %35 = arith.mulf %33, %34 : vector<1x256xf32>
    %cst_19 = arith.constant 9.99999974E-6 : f32
    %36 = vector.broadcast %cst_19 : f32 to vector<1x256xf32>
    %37 = arith.addf %35, %36 : vector<1x256xf32>
    %38 = math.rsqrt %37 : vector<1x256xf32>
    %39 = vector.broadcast %38 : vector<1x256xf32> to vector<16x256xf32>
    %40 = arith.mulf %26, %39 : vector<16x256xf32>
    %41 = vector.broadcast %15 : vector<1x256xf32> to vector<16x256xf32>
    %42 = arith.mulf %41, %40 : vector<16x256xf32>
    %43 = vector.broadcast %16 : vector<1x256xf32> to vector<16x256xf32>
    %44 = arith.addf %42, %43 : vector<16x256xf32>
    %cst_20 = arith.constant 2.000000e-01 : f32
    %45 = vector.broadcast %cst_20 : f32 to vector<16x256xf32>
    %46 = arith.mulf %45, %44 : vector<16x256xf32>
    %47 = arith.maximumf %44, %46 : vector<16x256xf32>
    %48 = arith.truncf %47 : vector<16x256xf32> to vector<16x256xbf16>
    %c0_21 = arith.constant 0 : index
    %c0_22 = arith.constant 0 : index
    %49 = vector.load %arg6[%c0_21, %c0_22] : memref<256x512xbf16, #tpu.memory_space<vmem>>, vector<256x512xbf16>
    %cst_23 = arith.constant dense<0.000000e+00> : vector<16x512xf32>
    %50 = tpu.matmul %48, %49, %cst_23 {dimension_numbers = #tpu.dot_dimension_numbers<[1], [0], [0], [1], [0, 0, 1, 1], [], []>} : vector<16x256xbf16>, vector<256x512xbf16>, vector<16x512xf32> -> vector<16x512xf32>
    %c0_24 = arith.constant 0 : index
    %c0_25 = arith.constant 0 : index
    %51 = vector.load %arg7[%c0_24, %c0_25] : memref<1x512xf32, #tpu.memory_space<vmem>>, vector<1x512xf32>
    %c0_26 = arith.constant 0 : index
    %c0_27 = arith.constant 0 : index
    %52 = vector.load %arg8[%c0_26, %c0_27] : memref<1x512xf32, #tpu.memory_space<vmem>>, vector<1x512xf32>
    %cst_28 = arith.constant 0.000000e+00 : f32
    %53 = vector.shape_cast %2 : vector<16x1xi1> to vector<16x1xi1>
    %54 = vector.broadcast %53 : vector<16x1xi1> to vector<16x512xi1>
    %55 = vector.broadcast %cst_28 : f32 to vector<16x512xf32>
    %56 = arith.select %54, %50, %55 : vector<16x512xi1>, vector<16x512xf32>
    %cst_29 = arith.constant dense<0.000000e+00> : vector<512xf32>
    %57 = vector.multi_reduction <add>, %56, %cst_29 [0] : vector<16x512xf32> to vector<512xf32>
    %58 = vector.shape_cast %57 : vector<512xf32> to vector<1x512xf32>
    %cst_30 = arith.constant 1.250000e-01 : f32
    %59 = vector.broadcast %cst_30 : f32 to vector<1x512xf32>
    %60 = arith.mulf %58, %59 : vector<1x512xf32>
    %61 = vector.broadcast %60 : vector<1x512xf32> to vector<16x512xf32>
    %62 = arith.subf %50, %61 : vector<16x512xf32>
    %cst_31 = arith.constant 0.000000e+00 : f32
    %63 = vector.shape_cast %2 : vector<16x1xi1> to vector<16x1xi1>
    %64 = vector.broadcast %63 : vector<16x1xi1> to vector<16x512xi1>
    %65 = vector.broadcast %cst_31 : f32 to vector<16x512xf32>
    %66 = arith.select %64, %62, %65 : vector<16x512xi1>, vector<16x512xf32>
    %67 = arith.mulf %66, %66 : vector<16x512xf32>
    %cst_32 = arith.constant dense<0.000000e+00> : vector<512xf32>
    %68 = vector.multi_reduction <add>, %67, %cst_32 [0] : vector<16x512xf32> to vector<512xf32>
    %69 = vector.shape_cast %68 : vector<512xf32> to vector<1x512xf32>
    %cst_33 = arith.constant 1.250000e-01 : f32
    %70 = vector.broadcast %cst_33 : f32 to vector<1x512xf32>
    %71 = arith.mulf %69, %70 : vector<1x512xf32>
    %cst_34 = arith.constant 9.99999974E-6 : f32
    %72 = vector.broadcast %cst_34 : f32 to vector<1x512xf32>
    %73 = arith.addf %71, %72 : vector<1x512xf32>
    %74 = math.rsqrt %73 : vector<1x512xf32>
    %75 = vector.broadcast %74 : vector<1x512xf32> to vector<16x512xf32>
    %76 = arith.mulf %62, %75 : vector<16x512xf32>
    %77 = vector.broadcast %51 : vector<1x512xf32> to vector<16x512xf32>
    %78 = arith.mulf %77, %76 : vector<16x512xf32>
    %79 = vector.broadcast %52 : vector<1x512xf32> to vector<16x512xf32>
    %80 = arith.addf %78, %79 : vector<16x512xf32>
    %cst_35 = arith.constant 2.000000e-01 : f32
    %81 = vector.broadcast %cst_35 : f32 to vector<16x512xf32>
    %82 = arith.mulf %81, %80 : vector<16x512xf32>
    %83 = arith.maximumf %80, %82 : vector<16x512xf32>
    %84 = arith.truncf %83 : vector<16x512xf32> to vector<16x512xbf16>
    %c0_36 = arith.constant 0 : index
    %c0_37 = arith.constant 0 : index
    %85 = vector.load %arg9[%c0_36, %c0_37] : memref<512x896xbf16, #tpu.memory_space<vmem>>, vector<512x896xbf16>
    %cst_38 = arith.constant dense<0.000000e+00> : vector<16x896xf32>
    %86 = tpu.matmul %84, %85, %cst_38 {dimension_numbers = #tpu.dot_dimension_numbers<[1], [0], [0], [1], [0, 0, 1, 1], [], []>} : vector<16x512xbf16>, vector<512x896xbf16>, vector<16x896xf32> -> vector<16x896xf32>
    %c0_39 = arith.constant 0 : index
    %c0_40 = arith.constant 0 : index
    %87 = vector.load %arg10[%c0_39, %c0_40] : memref<1x896xf32, #tpu.memory_space<vmem>>, vector<1x896xf32>
    %88 = vector.broadcast %87 : vector<1x896xf32> to vector<16x896xf32>
    %89 = arith.addf %86, %88 : vector<16x896xf32>
    %90 = math.tanh %89 : vector<16x896xf32>
    %c0_41 = arith.constant 0 : index
    %c0_42 = arith.constant 0 : index
    %91 = vector.load %arg11[%c0_41, %c0_42] : memref<16x896xf32, #tpu.memory_space<vmem>>, vector<16x896xf32>
    tpu.vector_store %arg11[%c0_41, %c0_42], %90 {strides = array<i32>} : memref<16x896xf32, #tpu.memory_space<vmem>>, vector<16x896xf32>,
    return
  }
}

</mosaic_0001>

<bundles_post_ra>
// kernel: tpu_custom_call.1
= control target key start
LH: loop header
LB: loop body
LE: loop exit
PB: predicated region body
PF: predicated region fallthrough
CT: control target
= control target key end

     0   :  { %16 = vsyncpa [#allocation3], 0  ;;  %s4416_s0 = inlined_call_operand.hbm [shape: bf16[16,128], index: 0, kind: input, shape index: {}]   ;;  %s4417_s1 = inlined_call_operand.hbm [shape: bf16[128,128], index: 1, kind: input, shape index: {}]   ;;  %s4418_s2 = inlined_call_operand.hbm [shape: f32[1,128], index: 2, kind: input, shape index: {}]   ;;  %s4419_s3 = inlined_call_operand.hbm [shape: bf16[128,256], index: 3, kind: input, shape index: {}]   ;;  %s4420_s4 = inlined_call_operand.hbm [shape: f32[1,256], index: 4, kind: input, shape index: {}]   ;;  %s4421_s5 = inlined_call_operand.vmem [shape: f32[1,256], index: 5, kind: input, shape index: {}]   ;;  %s4422_s6 = inlined_call_operand.hbm [shape: bf16[256,512], index: 6, kind: input, shape index: {}]   ;;  %s4423_s7 = inlined_call_operand.vmem [shape: f32[1,512], index: 7, kind: input, shape index: {}]   ;;  %s4424_s8 = inlined_call_operand.vmem [shape: f32[1,512], index: 8, kind: input, shape index: {}]   ;;  %s4425_s9 = inlined_call_operand.hbm [shape: bf16[512,896], index: 9, kind: input, shape index: {}]   ;;  %s4426_s10 = inlined_call_operand.vmem [shape: f32[1,896], index: 10, kind: input, shape index: {}]   ;;  %s4427_s11 = inlined_call_operand.hbm [shape: f32[16,896], index: 11, kind: output, shape index: {}]  }
   0x1   :  { %17 = vsyncpa [#allocation6], 0 }
   0x2   :  { %18 = vsyncpa [#allocation9], 0 }
   0x3   :  { %19 = vsyncpa [#allocation12], 0 }
   0x4   :  { %20 = vsyncpa [#allocation4], 0  ;;  %s4104_s17 = smov [#allocation5]   ;;  %s4105_s19 = smov [#allocation8]  }
   0x5   :  { %s38_s18 = sshll.u32 %s4104_s17, 4  ;;  %s60_s20 = sshll.u32 %s4105_s19, 4  ;;  %s39_s18 = int_to_ptr.vmem [resolvable:$true] %s38_s18  ;;  %s4185_s20 = int_to_ptr.vmem [resolvable:$true] %s60_s20 }
   0x6   :  { %s3918_s23 = scalar_lea.hbm %s4417_s1, 1024 }
   0x7   :  { %p3919_p0 = scmp.ne.s32.totalorder %s4417_s1, %s3918_s23  ;;  %p3922_p1 = scmp.lt.u32.totalorder %s3918_s23, %s4417_s1 }
   0x9   :  { %p3924_p2 = pnand %p3922_p1, %p3919_p0 }
   0xb   :  { %3927 = shalt.err (!%p3924_p2)
}
   0xc   :  { %s3928_s28 = scalar_lea.vmem %s39_s18, 1024  ;;  %p3933_p4 = scmp.lt.s32.totalorder %s39_s18, %s39_s18 }
   0xd   :  { %p3929_p3 = scmp.ne.s32.totalorder %s39_s18, %s3928_s28  ;;  %p3934_p5 = scmp.lt.s32.totalorder %s3928_s28, %s3928_s28 }
   0xf   :  { %p3935_p6 = por %p3934_p5, %p3933_p4 }
  0x11   :  { %p3936_p7 = pnand %p3935_p6, %p3929_p3 }
  0x13   :  { %3939 = shalt.err (!%p3936_p7)
}
  0x14   :  { %s4106_s29 = smov 64   ;;  %s4107_s30 = smov 4  }
  0x15   :  { %44 = dma.hbm_to_vmem [thread:$0]  %s4417_s1, 1024, %s39_s18, [#allocation6], %s4106_s29, %s4106_s29, %s4107_s30  }
  0x16   :  { %s3940_s16 = scalar_lea.hbm %s4419_s3, 2048 }
  0x17   :  { %p3941_p8 = scmp.ne.s32.totalorder %s4419_s3, %s3940_s16  ;;  %p3944_p9 = scmp.lt.u32.totalorder %s3940_s16, %s4419_s3 }
  0x19   :  { %p3946_p10 = pnand %p3944_p9, %p3941_p8 }
  0x1b   :  { %3949 = shalt.err (!%p3946_p10)
}
  0x1c   :  { %s3950_s23 = scalar_lea.vmem %s4185_s20, 2048  ;;  %p3955_p12 = scmp.lt.s32.totalorder %s4185_s20, %s4185_s20 }
  0x1d   :  { %p3951_p11 = scmp.ne.s32.totalorder %s4185_s20, %s3950_s23  ;;  %p3956_p13 = scmp.lt.s32.totalorder %s3950_s23, %s3950_s23 }
  0x1f   :  { %p3957_p0 = por %p3956_p13, %p3955_p12 }
  0x21   :  { %p3958_p1 = pnand %p3957_p0, %p3951_p11 }
  0x23   :  { %3961 = shalt.err (!%p3958_p1)
}
  0x24   :  { %s4108_s1 = smov 128   ;;  %s4109_s18 = smov 8  }
  0x25   :  { %66 = dma.hbm_to_vmem [thread:$0]  %s4419_s3, 2048, %s4185_s20, [#allocation9], %s4108_s1, %s4108_s1, %s4109_s18  }
  0x26   :  { %s4110_s26 = smov [#allocation11]   ;;  %s3962_s13 = scalar_lea.hbm %s4422_s6, 8192 }
  0x27   :  { %s84_s27 = sshll.u32 %s4110_s26, 4  ;;  %p3963_p2 = scmp.ne.s32.totalorder %s4422_s6, %s3962_s13  ;;  %s85_s27 = int_to_ptr.vmem [resolvable:$true] %s84_s27 }
  0x28   :  { %p3966_p3 = scmp.lt.u32.totalorder %s3962_s13, %s4422_s6 }
  0x2a   :  { %p3968_p4 = pnand %p3966_p3, %p3963_p2 }
  0x2c   :  { %3971 = shalt.err (!%p3968_p4)
}
  0x2d   :  { %s3972_s19 = scalar_lea.vmem %s85_s27, 8192  ;;  %p3977_p6 = scmp.lt.s32.totalorder %s85_s27, %s85_s27 }
  0x2e   :  { %p3973_p5 = scmp.ne.s32.totalorder %s85_s27, %s3972_s19  ;;  %p3978_p7 = scmp.lt.s32.totalorder %s3972_s19, %s3972_s19 }
  0x30   :  { %p3979_p8 = por %p3978_p7, %p3977_p6 }
  0x32   :  { %p3980_p9 = pnand %p3979_p8, %p3973_p5 }
  0x34   :  { %3983 = shalt.err (!%p3980_p9)
}
  0x35   :  { %s4111_s3 = smov 256   ;;  %s4112_s20 = smov 16  }
  0x36   :  { %90 = dma.hbm_to_vmem [thread:$0]  %s4422_s6, 8192, %s85_s27, [#allocation12], %s4111_s3, %s4111_s3, %s4112_s20  }
  0x37   :  { %s4113_s23 = smov [#allocation2]   ;;  %s4114_s18 = smov [#allocation7]  }
  0x38   :  { %s26_s1 = sshll.u32 %s4113_s23, 4  ;;  %s51_s24 = sshll.u32 %s4114_s18, 4  ;;  %s27_s1 = int_to_ptr.vmem [resolvable:$true] %s26_s1  ;;  %s52_s24 = int_to_ptr.vmem [resolvable:$true] %s51_s24 }
  0x39   :  { %s3984_s28 = scalar_lea.hbm %s4416_s0, 128 }
  0x3a   :  { %p3985_p10 = scmp.ne.s32.totalorder %s4416_s0, %s3984_s28  ;;  %p3988_p11 = scmp.lt.u32.totalorder %s3984_s28, %s4416_s0 }
  0x3c   :  { %p3990_p12 = pnand %p3988_p11, %p3985_p10 }
  0x3e   :  { %3993 = shalt.err (!%p3990_p12)
}
  0x3f   :  { %s3994_s6 = scalar_lea.vmem %s27_s1, 128  ;;  %p3999_p0 = scmp.lt.s32.totalorder %s27_s1, %s27_s1 }
  0x40   :  { %p3995_p13 = scmp.ne.s32.totalorder %s27_s1, %s3994_s6  ;;  %p4000_p1 = scmp.lt.s32.totalorder %s3994_s6, %s3994_s6 }
  0x42   :  { %p4001_p2 = por %p4000_p1, %p3999_p0 }
  0x44   :  { %p4002_p3 = pnand %p4001_p2, %p3995_p13 }
  0x46   :  { %4005 = shalt.err (!%p4002_p3)
}
  0x47   :  { %32 = dma.hbm_to_vmem [thread:$0]  %s4416_s0, 128, %s27_s1, [#allocation3], %s4106_s29, %s4106_s29, %s4107_s30  }
  0x48   :  { %s4006_s3 = scalar_lea.hbm %s4418_s2, 16 }
  0x49   :  { %p4007_p4 = scmp.ne.s32.totalorder %s4418_s2, %s4006_s3  ;;  %p4010_p5 = scmp.lt.u32.totalorder %s4006_s3, %s4418_s2 }
  0x4b   :  { %p4012_p6 = pnand %p4010_p5, %p4007_p4 }
  0x4d   :  { %4015 = shalt.err (!%p4012_p6)
}
  0x4e   :  { %s4016_s18 = scalar_lea.vmem %s52_s24, 16  ;;  %s4020_s25 = scalar_lea.vmem %s52_s24, 32 }
  0x4f   :  { %p4017_p7 = scmp.ne.s32.totalorder %s52_s24, %s4016_s18  ;;  %p4021_p8 = scmp.lt.s32.totalorder %s52_s24, %s52_s24 }
  0x50   :  { %p4022_p9 = scmp.lt.s32.totalorder %s4020_s25, %s4016_s18 }
  0x52   :  { %p4023_p10 = por %p4022_p9, %p4021_p8 }
  0x54   :  { %p4024_p11 = pnand %p4023_p10, %p4017_p7 }
  0x56   :  { %4027 = shalt.err (!%p4024_p11)
}
  0x57   :  { %54 = dma.hbm_to_vmem [thread:$0]  %s4418_s2, 16, %s52_s24, [#allocation6]  }
  0x58   :  { %s4115_s30 = smov [#allocation10]   ;;  %s4116_s26 = smov [#allocation13]  }
  0x59   :  { %s73_s1 = sshll.u32 %s4115_s30, 4  ;;  %s100_s28 = sshll.u32 %s4116_s26, 4  ;;  %s74_s1 = int_to_ptr.vmem [resolvable:$true] %s73_s1  ;;  %s101_s28 = int_to_ptr.vmem [resolvable:$true] %s100_s28 }
  0x5a   :  { %s4028_s14 = scalar_lea.hbm %s4420_s4, 32 }
  0x5b   :  { %p4029_p12 = scmp.ne.s32.totalorder %s4420_s4, %s4028_s14  ;;  %p4032_p13 = scmp.lt.u32.totalorder %s4028_s14, %s4420_s4 }
  0x5d   :  { %p4034_p0 = pnand %p4032_p13, %p4029_p12 }
  0x5f   :  { %4037 = shalt.err (!%p4034_p0)
}
  0x60   :  { %s4038_s2 = scalar_lea.vmem %s74_s1, 32  ;;  %p4043_p2 = scmp.lt.s32.totalorder %s74_s1, %s74_s1 }
  0x61   :  { %p4039_p1 = scmp.ne.s32.totalorder %s74_s1, %s4038_s2  ;;  %p4044_p3 = scmp.lt.s32.totalorder %s4038_s2, %s4038_s2 }
  0x63   :  { %p4045_p4 = por %p4044_p3, %p4043_p2 }
  0x65   :  { %p4046_p5 = pnand %p4045_p4, %p4039_p1 }
  0x67   :  { %4049 = shalt.err (!%p4046_p5)
}
  0x68   :  { %76 = dma.hbm_to_vmem [thread:$0]  %s4420_s4, 32, %s74_s1, [#allocation9]  }
  0x69   :  { %s4050_s20 = scalar_lea.hbm %s4425_s9, 28672 }
  0x6a   :  { %p4051_p6 = scmp.ne.s32.totalorder %s4425_s9, %s4050_s20  ;;  %p4054_p7 = scmp.lt.u32.totalorder %s4050_s20, %s4425_s9 }
  0x6c   :  { %p4056_p8 = pnand %p4054_p7, %p4051_p6 }
  0x6e   :  { %4059 = shalt.err (!%p4056_p8)
}
  0x6f   :  { %s4060_s25 = scalar_lea.vmem %s101_s28, 28672  ;;  %p4065_p10 = scmp.lt.s32.totalorder %s101_s28, %s101_s28 }
  0x70   :  { %p4061_p9 = scmp.ne.s32.totalorder %s101_s28, %s4060_s25  ;;  %p4066_p11 = scmp.lt.s32.totalorder %s4060_s25, %s4060_s25 }
  0x72   :  { %p4067_p12 = por %p4066_p11, %p4065_p10 }
  0x74   :  { %p4068_p13 = pnand %p4067_p12, %p4061_p9 }
  0x76   :  { %4071 = shalt.err (!%p4068_p13)
}
  0x77   :  { %s4117_s4 = smov 448   ;;  %s4118_s0 = smov 28  }
  0x78   :  { %106 = dma.hbm_to_vmem [thread:$0]  %s4425_s9, 28672, %s101_s28, [#allocation12], %s4117_s4, %s4117_s4, %s4118_s0  }
  0x79   :  { %4094 = dma.done.wait [#allocation3], 128  }
  0x7a   :  { %4095 = vsyncadd [#allocation3], 4294967168 }
  0x7b   :  { %4096 = dma.done.wait [#allocation6], 1040  }
  0x7c   :  { %4097 = vsyncadd [#allocation6], 4294966256 }
  0x7d   :  { %4098 = dma.done.wait [#allocation9], 2080  }
  0x7e   :  { %4099 = vsyncadd [#allocation9], 4294965216 }
  0x7f   :  { %4100 = dma.done.wait [#allocation12], 36864  }
  0x80   :  { %4101 = vsyncadd [#allocation12], 4294930432  ;;  %v4119_v0 = vmov 0.0   ;;  %vm4120_vm0 = vmmov 0   ;;  %v3429_v1 = vld [vmem:[#allocation5] sm:$0xff]   ;;  %v3430_v2 = vld [vmem:[#allocation5 + $0x8] sm:$0xff]  }
  0x81   :  { %3364 = vmatprep.subr.bf16.mxu1 %v4119_v0  ;;  %3380 = vmatprep.mubr.msk.bf16.mxu1 %vm4120_vm0, %v4119_v0  ;;  %v3431_v3 = vld [vmem:[#allocation5 + $0x10] sm:$0xff]   ;;  %v3432_v4 = vld [vmem:[#allocation5 + $0x18] sm:$0xff]   ;;  %v3433_v5 = vld [vmem:[#allocation5 + $0x20] sm:$0xff]   ;;  %v4121_v26 = vmov 0  }
  0x82   :  { %3365 = vmatpush3.bf16.msra.mxu1 %v3429_v1  ;;  %v3434_v6 = vld [vmem:[#allocation5 + $0x28] sm:$0xff]   ;;  %v3435_v7 = vld [vmem:[#allocation5 + $0x30] sm:$0xff]   ;;  %v3436_v8 = vld [vmem:[#allocation5 + $0x38] sm:$0xff]  }
  0x83   :  { %3366 = vmatprep.subr.bf16.mxu1 %v4119_v0  ;;  %v3440_v9 = vld [vmem:[#allocation8 + $0x4] ss:$8 sps:$4 sm:$0xff]   ;;  %v3437_v10 = vld [vmem:[#allocation2] sm:$0xff]   ;;  %v3438_v11 = vld [vmem:[#allocation8] ss:$8 sps:$4 sm:$0xff]  }
  0x84   :  { %v3443_v12 = vld [vmem:[#allocation8 + $0x14] ss:$8 sps:$4 sm:$0xff]   ;;  %v3441_v13 = vld [vmem:[#allocation8 + $0x10] ss:$8 sps:$4 sm:$0xff]   ;;  %v3446_v14 = vld [vmem:[#allocation8 + $0x24] ss:$8 sps:$4 sm:$0xff]  }
  0x85   :  { %v3444_v15 = vld [vmem:[#allocation8 + $0x20] ss:$8 sps:$4 sm:$0xff]   ;;  %v3449_v16 = vld [vmem:[#allocation8 + $0x34] ss:$8 sps:$4 sm:$0xff]   ;;  %v3447_v17 = vld [vmem:[#allocation8 + $0x30] ss:$8 sps:$4 sm:$0xff]  }
  0x86   :  { %3367 = vmatpush3.bf16.msra.mxu1 %v3430_v2  ;;  %v3452_v18 = vld [vmem:[#allocation8 + $0x44] ss:$8 sps:$4 sm:$0xff]   ;;  %v3450_v19 = vld [vmem:[#allocation8 + $0x40] ss:$8 sps:$4 sm:$0xff]   ;;  %v3455_v20 = vld [vmem:[#allocation8 + $0x54] ss:$8 sps:$4 sm:$0xff]  }
  0x87   :  { %3368 = vmatprep.subr.bf16.mxu1 %v4119_v0  ;;  %v3453_v21 = vld [vmem:[#allocation8 + $0x50] ss:$8 sps:$4 sm:$0xff]   ;;  %v3458_v22 = vld [vmem:[#allocation8 + $0x64] ss:$8 sps:$4 sm:$0xff]   ;;  %v3456_v23 = vld [vmem:[#allocation8 + $0x60] ss:$8 sps:$4 sm:$0xff]  }
  0x88   :  { %v3461_v24 = vld [vmem:[#allocation8 + $0x74] ss:$8 sps:$4 sm:$0xff]   ;;  %v3459_v25 = vld [vmem:[#allocation8 + $0x70] ss:$8 sps:$4 sm:$0xff]  }
  0x89   :  { %v3462_v27 = vld [vmem:[#allocation11 + $0x4] ss:$16 sps:$4 sm:$0xff]   ;;  %v3466_v28 = vld [vmem:[#allocation11 + $0xc] ss:$16 sps:$4 sm:$0xff]   ;;  %v3467_v29 = vld [vmem:[#allocation11] ss:$16 sps:$4 sm:$0xff]  }
  0x8a   :  { %3369 = vmatpush3.bf16.msra.mxu1 %v3431_v3  ;;  %886 = vmatprep.subr.bf16.mxu0 %v3462_v27  ;;  %v2997_v30 = vld [vmem:[#allocation7] ss:$0 sm:$0xff]  ;;  %v3464_v41 = vld [vmem:[#allocation11 + $0x8] ss:$16 sps:$4 sm:$0xff]   ;;  %v3468_v43 = vld [vmem:[#allocation11 + $0x24] ss:$16 sps:$4 sm:$0xff]  }
  0x8b   :  { %3370 = vmatprep.subr.bf16.mxu1 %v4119_v0  ;;  %887 = vmatpush1.bf16.msra.mxu0 %v3467_v29  ;;  %v3472_v44 = vld [vmem:[#allocation11 + $0x2c] ss:$16 sps:$4 sm:$0xff]   ;;  %v3470_v45 = vld [vmem:[#allocation11 + $0x28] ss:$16 sps:$4 sm:$0xff]   ;;  %v3473_v46 = vld [vmem:[#allocation11 + $0x20] ss:$16 sps:$4 sm:$0xff]  }
  0x8c   :  { %888 = vmatprep.subr.bf16.mxu0 %v3468_v43  ;;  %v3474_v47 = vld [vmem:[#allocation11 + $0x44] ss:$16 sps:$4 sm:$0xff]   ;;  %v3478_v48 = vld [vmem:[#allocation11 + $0x4c] ss:$16 sps:$4 sm:$0xff]   ;;  %v3476_v49 = vld [vmem:[#allocation11 + $0x48] ss:$16 sps:$4 sm:$0xff]  }
  0x8d   :  { %v3479_v50 = vld [vmem:[#allocation11 + $0x40] ss:$16 sps:$4 sm:$0xff]   ;;  %v3480_v51 = vld [vmem:[#allocation11 + $0x64] ss:$16 sps:$4 sm:$0xff]   ;;  %v3482_v52 = vld [vmem:[#allocation11 + $0x68] ss:$16 sps:$4 sm:$0xff]  }
  0x8e   :  { %3371 = vmatpush3.bf16.msra.mxu1 %v3432_v4  ;;  %v3484_v53 = vld [vmem:[#allocation11 + $0x6c] ss:$16 sps:$4 sm:$0xff]   ;;  %v3485_v54 = vld [vmem:[#allocation11 + $0x60] ss:$16 sps:$4 sm:$0xff]   ;;  %v3486_v55 = vld [vmem:[#allocation11 + $0x84] ss:$16 sps:$4 sm:$0xff]  }
  0x8f   :  { %3372 = vmatprep.subr.bf16.mxu1 %v4119_v0  ;;  %889 = vmatpush1.bf16.msra.mxu0 %v3473_v46  ;;  %v3490_v56 = vld [vmem:[#allocation11 + $0x8c] ss:$16 sps:$4 sm:$0xff]   ;;  %v3488_v57 = vld [vmem:[#allocation11 + $0x88] ss:$16 sps:$4 sm:$0xff]   ;;  %v3491_v58 = vld [vmem:[#allocation11 + $0x80] ss:$16 sps:$4 sm:$0xff]  }
  0x90   :  { %890 = vmatprep.subr.bf16.mxu0 %v3474_v47  ;;  %v3492_v59 = vld [vmem:[#allocation11 + $0xa4] ss:$16 sps:$4 sm:$0xff]   ;;  %v3496_v60 = vld [vmem:[#allocation11 + $0xac] ss:$16 sps:$4 sm:$0xff]   ;;  %v3494_v61 = vld [vmem:[#allocation11 + $0xa8] ss:$16 sps:$4 sm:$0xff]  }
  0x91   :  { %v3497_v62 = vld [vmem:[#allocation11 + $0xa0] ss:$16 sps:$4 sm:$0xff]   ;;  %v3498_v63 = vld [vmem:[#allocation11 + $0xc4] ss:$16 sps:$4 sm:$0xff]   ;;  %v3500_v1 = vld [vmem:[#allocation11 + $0xc8] ss:$16 sps:$4 sm:$0xff]  }
  0x92   :  { %3373 = vmatpush3.bf16.msra.mxu1 %v3433_v5  ;;  %v3503_v2 = vld [vmem:[#allocation11 + $0xc0] ss:$16 sps:$4 sm:$0xff]   ;;  %v3504_v3 = vld [vmem:[#allocation11 + $0xe4] ss:$16 sps:$4 sm:$0xff]   ;;  %v3508_v4 = vld [vmem:[#allocation11 + $0xec] ss:$16 sps:$4 sm:$0xff]  }
  0x93   :  { %3374 = vmatprep.subr.bf16.mxu1 %v4119_v0  ;;  %891 = vmatpush1.bf16.msra.mxu0 %v3479_v50  ;;  %v3506_v5 = vld [vmem:[#allocation11 + $0xe8] ss:$16 sps:$4 sm:$0xff]   ;;  %v3540_v27 = vld [vmem:[#allocation11 + $0x1a4] ss:$16 sps:$4 sm:$0xff]  }
  0x94   :  { %892 = vmatprep.subr.bf16.mxu0 %v3480_v51  ;;  %v3542_v29 = vld [vmem:[#allocation11 + $0x1a8] ss:$16 sps:$4 sm:$0xff]  }
  0x96   :  { %3375 = vmatpush3.bf16.msra.mxu1 %v3434_v6  ;;  %v3509_v6 = vld [vmem:[#allocation11 + $0xe0] ss:$16 sps:$4 sm:$0xff]  }
  0x97   :  { %3376 = vmatprep.subr.bf16.mxu1 %v4119_v0  ;;  %893 = vmatpush1.bf16.msra.mxu0 %v3485_v54 }
  0x98   :  { %894 = vmatprep.subr.bf16.mxu0 %v3486_v55 }
  0x9a   :  { %3377 = vmatpush3.bf16.msra.mxu1 %v3435_v7  ;;  %v3510_v7 = vld [vmem:[#allocation11 + $0x104] ss:$16 sps:$4 sm:$0xff]  }
  0x9b   :  { %3378 = vmatprep.subr.bf16.mxu1 %v4119_v0  ;;  %895 = vmatpush1.bf16.msra.mxu0 %v3491_v58  ;;  %v3502_v0 = vld [vmem:[#allocation11 + $0xcc] ss:$16 sps:$4 sm:$0xff]  }
  0x9c   :  { %896 = vmatprep.subr.bf16.mxu0 %v3492_v59 }
  0x9e   :  { %3379 = vmatpush3.bf16.msra.mxu1 %v3436_v8  ;;  %v3514_v8 = vld [vmem:[#allocation11 + $0x10c] ss:$16 sps:$4 sm:$0xff]  }
  0x9f   :  { %357 = vmatprep.subr.bf16.mxu1 %v3440_v9  ;;  %897 = vmatpush1.bf16.msra.mxu0 %v3497_v62  ;;  %v3512_v9 = vld [vmem:[#allocation11 + $0x108] ss:$16 sps:$4 sm:$0xff]  }
  0xa0   :  { %898 = vmatprep.subr.bf16.mxu0 %v3498_v63 }
  0xa1   :  { %3381 = vmatmul.mubr.bf16.vlgmr.msra.gmra.mrb[0].mxu1 %v3437_v10  ;;  %v3515_v10 = vld [vmem:[#allocation11 + $0x100] ss:$16 sps:$4 sm:$0xff]  }
  0xa2   :  { %358 = vmatpush1.bf16.msra.mxu1 %v3438_v11  ;;  %389 = vmatprep.mubr.bf16.mxu1 %v4121_v26  ;;  %v3516_v11 = vld [vmem:[#allocation11 + $0x124] ss:$16 sps:$4 sm:$0xff]   ;;  %v3539_v26 = vld [vmem:[#allocation11 + $0x180] ss:$16 sps:$4 sm:$0xff]  }
  0xa3   :  { %359 = vmatprep.subr.bf16.mxu1 %v3443_v12  ;;  %899 = vmatpush1.bf16.msra.mxu0 %v3503_v2  ;;  %v3520_v12 = vld [vmem:[#allocation11 + $0x12c] ss:$16 sps:$4 sm:$0xff]  }
  0xa4   :  { %900 = vmatprep.subr.bf16.mxu0 %v3504_v3 }
  0xa6   :  { %360 = vmatpush1.bf16.msra.mxu1 %v3441_v13  ;;  %v3518_v13 = vld [vmem:[#allocation11 + $0x128] ss:$16 sps:$4 sm:$0xff]  }
  0xa7   :  { %361 = vmatprep.subr.bf16.mxu1 %v3446_v14  ;;  %901 = vmatpush1.bf16.msra.mxu0 %v3509_v6  ;;  %v3521_v14 = vld [vmem:[#allocation11 + $0x120] ss:$16 sps:$4 sm:$0xff]  }
  0xa8   :  { %902 = vmatprep.subr.bf16.mxu0 %v3510_v7 }
  0xaa   :  { %362 = vmatpush1.bf16.msra.mxu1 %v3444_v15  ;;  %v3522_v15 = vld [vmem:[#allocation11 + $0x144] ss:$16 sps:$4 sm:$0xff]  }
  0xab   :  { %363 = vmatprep.subr.bf16.mxu1 %v3449_v16  ;;  %903 = vmatpush1.bf16.msra.mxu0 %v3515_v10  ;;  %v3526_v16 = vld [vmem:[#allocation11 + $0x14c] ss:$16 sps:$4 sm:$0xff]  }
  0xac   :  { %904 = vmatprep.subr.bf16.mxu0 %v3516_v11 }
  0xae   :  { %364 = vmatpush1.bf16.msra.mxu1 %v3447_v17  ;;  %v3524_v17 = vld [vmem:[#allocation11 + $0x148] ss:$16 sps:$4 sm:$0xff]  }
  0xaf   :  { %365 = vmatprep.subr.bf16.mxu1 %v3452_v18  ;;  %905 = vmatpush1.bf16.msra.mxu0 %v3521_v14  ;;  %v3527_v18 = vld [vmem:[#allocation11 + $0x140] ss:$16 sps:$4 sm:$0xff]   ;;  %v463_v14 = vlaneseq }
  0xb0   :  { %906 = vmatprep.subr.bf16.mxu0 %v3522_v15 }
  0xb2   :  { %366 = vmatpush1.bf16.msra.mxu1 %v3450_v19  ;;  %v3528_v19 = vld [vmem:[#allocation11 + $0x164] ss:$16 sps:$4 sm:$0xff]  }
  0xb3   :  { %367 = vmatprep.subr.bf16.mxu1 %v3455_v20  ;;  %907 = vmatpush1.bf16.msra.mxu0 %v3527_v18  ;;  %v3532_v20 = vld [vmem:[#allocation11 + $0x16c] ss:$16 sps:$4 sm:$0xff]   ;;  %v4282_v18 = vshrl.u32 %v463_v14, 7  ;;  %v3605_v14 = vld [vmem:[#allocation13 + $0x194] ss:$28 sps:$4 sm:$0xff]  }
  0xb4   :  { %908 = vmatprep.subr.bf16.mxu0 %v3528_v19 }
  0xb5   :  { %v4285_v19 = vsub.s32 0, %v4282_v18 }
  0xb6   :  { %368 = vmatpush1.bf16.msra.mxu1 %v3453_v21  ;;  %v3530_v21 = vld [vmem:[#allocation11 + $0x168] ss:$16 sps:$4 sm:$0xff]  }
  0xb7   :  { %369 = vmatprep.subr.bf16.mxu1 %v3458_v22  ;;  %v3533_v22 = vld [vmem:[#allocation11 + $0x160] ss:$16 sps:$4 sm:$0xff]  }
  0xb8   :  { %909 = vmatpush1.bf16.msra.mxu0 %v3533_v22  ;;  %v401_v22 = vld [vmem:[%s4421_s5] sm:$0x3] }
  0xba   :  { %370 = vmatpush1.bf16.msra.mxu1 %v3456_v23  ;;  %v3534_v23 = vld [vmem:[#allocation11 + $0x184] ss:$16 sps:$4 sm:$0xff]  }
  0xbb   :  { %371 = vmatprep.subr.bf16.mxu1 %v3461_v24  ;;  %v3538_v24 = vld [vmem:[#allocation11 + $0x18c] ss:$16 sps:$4 sm:$0xff]   ;;  %910 = vmatprep.subr.bf16.mxu0 %v3534_v23 }
  0xbc   :  { %911 = vmatpush1.bf16.msra.mxu0 %v3539_v26 }
  0xbd   :  { %912 = vmatprep.subr.bf16.mxu0 %v3540_v27 }
  0xbe   :  { %372 = vmatpush1.bf16.msra.mxu1 %v3459_v25  ;;  %v3536_v25 = vld [vmem:[#allocation11 + $0x188] ss:$16 sps:$4 sm:$0xff]  }
  0xbf   :  { %929 = vmatprep.subr.bf16.mxu1 %v3466_v28  ;;  %v3544_v28 = vld [vmem:[#allocation11 + $0x1ac] ss:$16 sps:$4 sm:$0xff]  }
 0x174   :  { %v249_v31 = vpop.f32.mrb[0].mxu1 }
 0x175   :  { %v250_v32 = vadd.f32 %v2997_v30, %v249_v31  ;;  %v3382_v33 = vpop.f32.mrb[1].mxu1  ;;  %v3546_v31 = vld [vmem:[#allocation11 + $0x1c4] ss:$16 sps:$4 sm:$0xff]  }
 0x176   :  { %v252_v34 = vpop.f32.mrb[2].mxu1  ;;  %v3550_v33 = vld [vmem:[#allocation11 + $0x1cc] ss:$16 sps:$4 sm:$0xff]  }
 0x177   :  { %v256_v35 = vmul.f32 0.2, %v250_v32  ;;  %v253_v36 = vadd.f32 %v2997_v30, %v252_v34  ;;  %v3383_v37 = vpop.f32.mrb[3].mxu1  ;;  %v3545_v30 = vld [vmem:[#allocation11 + $0x1a0] ss:$16 sps:$4 sm:$0xff]  }
 0x178   :  { %913 = vmatpush1.bf16.msra.mxu0 %v3545_v30  ;;  %v3551_v34 = vld [vmem:[#allocation11 + $0x1c0] ss:$16 sps:$4 sm:$0xff]  }
 0x179   :  { %v257_v38 = vmul.f32 0.2, %v253_v36  ;;  %v258_v39 = vmax.f32 %v250_v32, %v256_v35  ;;  %v3548_v32 = vld [vmem:[#allocation11 + $0x1c8] ss:$16 sps:$4 sm:$0xff]   ;;  %v3552_v35 = vld [vmem:[#allocation11 + $0x1e4] ss:$16 sps:$4 sm:$0xff]   ;;  %914 = vmatprep.subr.bf16.mxu0 %v3546_v31 }
 0x17a   :  { %v3557_v37 = vld [vmem:[#allocation11 + $0x1e0] ss:$16 sps:$4 sm:$0xff]  }
 0x17b   :  { %v259_v40 = vmax.f32 %v253_v36, %v257_v38  ;;  %v3556_v36 = vld [vmem:[#allocation11 + $0x1ec] ss:$16 sps:$4 sm:$0xff]   ;;  %v3554_v38 = vld [vmem:[#allocation11 + $0x1e8] ss:$16 sps:$4 sm:$0xff]  }
 0x17c   :  { %915 = vmatpush1.bf16.msra.mxu0 %v3551_v34 }
 0x17d   :  { %v260_v42 = vpack.c.bf16 %v259_v40, %v258_v39  ;;  %916 = vmatprep.subr.bf16.mxu0 %v3552_v35  ;;  %v3560_v39 = vld [vmem:[#allocation13 + $0x4] ss:$28 sps:$4 sm:$0xff]   ;;  %v3563_v40 = vld [vmem:[#allocation13 + $0xc] ss:$28 sps:$4 sm:$0xff]  }
 0x17f   :  { %390 = vmatmul.mubr.bf16.vlgmr.msra.gmra.mrb[4].mxu1 %v260_v42 }
 0x180   :  { %930 = vmatpush1.bf16.msra.mxu1 %v3464_v41  ;;  %917 = vmatpush1.bf16.msra.mxu0 %v3557_v37 }
 0x181   :  { %931 = vmatprep.subr.bf16.mxu1 %v3472_v44  ;;  %2609 = vmatprep.subr.bf16.mxu0 %v3560_v39 }
 0x184   :  { %932 = vmatpush1.bf16.msra.mxu1 %v3470_v45 }
 0x185   :  { %933 = vmatprep.subr.bf16.mxu1 %v3478_v48 }
 0x188   :  { %934 = vmatpush1.bf16.msra.mxu1 %v3476_v49 }
 0x189   :  { %935 = vmatprep.subr.bf16.mxu1 %v3484_v53 }
 0x18c   :  { %936 = vmatpush1.bf16.msra.mxu1 %v3482_v52 }
 0x18d   :  { %937 = vmatprep.subr.bf16.mxu1 %v3490_v56 }
 0x190   :  { %938 = vmatpush1.bf16.msra.mxu1 %v3488_v57 }
 0x191   :  { %939 = vmatprep.subr.bf16.mxu1 %v3496_v60 }
 0x194   :  { %940 = vmatpush1.bf16.msra.mxu1 %v3494_v61 }
 0x195   :  { %941 = vmatprep.subr.bf16.mxu1 %v3502_v0 }
 0x198   :  { %942 = vmatpush1.bf16.msra.mxu1 %v3500_v1 }
 0x199   :  { %943 = vmatprep.subr.bf16.mxu1 %v3508_v4 }
 0x19c   :  { %944 = vmatpush1.bf16.msra.mxu1 %v3506_v5 }
 0x19d   :  { %945 = vmatprep.subr.bf16.mxu1 %v3514_v8 }
 0x1a0   :  { %946 = vmatpush1.bf16.msra.mxu1 %v3512_v9 }
 0x1a1   :  { %947 = vmatprep.subr.bf16.mxu1 %v3520_v12 }
 0x1a4   :  { %948 = vmatpush1.bf16.msra.mxu1 %v3518_v13 }
 0x1a5   :  { %949 = vmatprep.subr.bf16.mxu1 %v3526_v16 }
 0x1a8   :  { %950 = vmatpush1.bf16.msra.mxu1 %v3524_v17 }
 0x1a9   :  { %951 = vmatprep.subr.bf16.mxu1 %v3532_v20  ;;  %v400_v20 = vld [vmem:[#allocation10] sm:$0x3] }
 0x1aa   :  { %v466_v23 = vrot.slane %v400_v20, %v4285_v19 }
 0x1ac   :  { %952 = vmatpush1.bf16.msra.mxu1 %v3530_v21  ;;  %v4288_v21 = vsub.s32 1, %v4282_v18 }
 0x1ad   :  { %953 = vmatprep.subr.bf16.mxu1 %v3538_v24 }
 0x1b0   :  { %954 = vmatpush1.bf16.msra.mxu1 %v3536_v25  ;;  %v470_v25 = vrot.slane %v400_v20, %v4288_v21  ;;  %v3611_v20 = vld [vmem:[#allocation13 + $0x1cc] ss:$28 sps:$4 sm:$0xff]  }
 0x1b1   :  { %955 = vmatprep.subr.bf16.mxu1 %v3544_v28 }
 0x1b4   :  { %956 = vmatpush1.bf16.msra.mxu1 %v3542_v29  ;;  %v481_v29 = vrot.slane %v401_v22, %v4285_v19 }
 0x1b5   :  { %957 = vmatprep.subr.bf16.mxu1 %v3550_v33 }
 0x1b8   :  { %958 = vmatpush1.bf16.msra.mxu1 %v3548_v32  ;;  %v485_v32 = vrot.slane %v401_v22, %v4288_v21  ;;  %v3606_v22 = vld [vmem:[#allocation13 + $0x1c0] ss:$28 sps:$4 sm:$0xff]  }
 0x1b9   :  { %959 = vmatprep.subr.bf16.mxu1 %v3556_v36 }
 0x1bc   :  { %960 = vmatpush1.bf16.msra.mxu1 %v3554_v38 }
 0x1bd   :  { %2695 = vmatprep.subr.bf16.mxu1 %v3563_v40 }
 0x252   :  { %v391_v41 = vpop.f32.mrb[4].mxu1 }
 0x253   :  { %v411_v42 = vrot.slane %v391_v41, 4  ;;  %v393_v43 = vpop.f32.mrb[5].mxu1 }
 0x254   :  { %v418_v44 = vrot.slane %v393_v43, 4  ;;  %v395_v45 = vpop.f32.mrb[6].mxu1 }
 0x255   :  { %v412_v46 = vadd.f32 %v411_v42, %v391_v41  ;;  %v397_v47 = vpop.f32.mrb[7].mxu1 }
 0x256   :  { %v419_v48 = vadd.f32 %v418_v44, %v393_v43 }
 0x257   :  { %v413_v49 = vrot.slane %v412_v46, 2 }
 0x258   :  { %v420_v50 = vrot.slane %v419_v48, 2 }
 0x259   :  { %v414_v51 = vadd.f32 %v413_v49, %v412_v46 }
 0x25a   :  { %v421_v52 = vadd.f32 %v420_v50, %v419_v48 }
 0x25b   :  { %v415_v53 = vrot.slane %v414_v51, 1 }
 0x25c   :  { %v422_v54 = vrot.slane %v421_v52, 1 }
 0x25d   :  { %v416_v55 = vadd.f32 %v415_v53, %v414_v51  ;;  %v3558_v51 = vld [vmem:[#allocation13] ss:$28 sps:$4 sm:$0xff]  }
 0x25e   :  { %v423_v56 = vadd.f32 %v422_v54, %v421_v52  ;;  %v3561_v52 = vld [vmem:[#allocation13 + $0x8] ss:$28 sps:$4 sm:$0xff]   ;;  %v3566_v53 = vld [vmem:[#allocation13 + $0x3c] ss:$28 sps:$4 sm:$0xff]  }
 0x25f   :  { %v424_v57 = vmul.f32 0.125, %v416_v55  ;;  %v3569_v54 = vld [vmem:[#allocation13 + $0x44] ss:$28 sps:$4 sm:$0xff]   ;;  %v3564_v55 = vld [vmem:[#allocation13 + $0x38] ss:$28 sps:$4 sm:$0xff]  }
 0x260   :  { %v425_v58 = vmul.f32 0.125, %v423_v56  ;;  %v3567_v56 = vld [vmem:[#allocation13 + $0x40] ss:$28 sps:$4 sm:$0xff]  }
 0x261   :  { %v426_v59 = vsub.f32 %v391_v41, %v424_v57  ;;  %v428_v60 = vsub.f32 %v395_v45, %v424_v57  ;;  %v3572_v57 = vld [vmem:[#allocation13 + $0x74] ss:$28 sps:$4 sm:$0xff]  }
 0x262   :  { %v427_v61 = vsub.f32 %v393_v43, %v425_v58  ;;  %v429_v62 = vsub.f32 %v397_v47, %v425_v58  ;;  %v3575_v58 = vld [vmem:[#allocation13 + $0x7c] ss:$28 sps:$4 sm:$0xff]  }
 0x263   :  { %v434_v63 = vmul.f32 %v426_v59, %v426_v59 }
 0x264   :  { %v435_v0 = vmul.f32 %v427_v61, %v427_v61 }
 0x265   :  { %v439_v1 = vrot.slane %v434_v63, 4 }
 0x266   :  { %v446_v2 = vrot.slane %v435_v0, 4 }
 0x267   :  { %v440_v3 = vadd.f32 %v439_v1, %v434_v63  ;;  %v3576_v63 = vld [vmem:[#allocation13 + $0xa8] ss:$28 sps:$4 sm:$0xff]  }
 0x268   :  { %v447_v4 = vadd.f32 %v446_v2, %v435_v0  ;;  %v3579_v0 = vld [vmem:[#allocation13 + $0xb0] ss:$28 sps:$4 sm:$0xff]   ;;  %v3584_v1 = vld [vmem:[#allocation13 + $0xe4] ss:$28 sps:$4 sm:$0xff]  }
 0x269   :  { %v441_v5 = vrot.slane %v440_v3, 2  ;;  %v3587_v2 = vld [vmem:[#allocation13 + $0xec] ss:$28 sps:$4 sm:$0xff]  }
 0x26a   :  { %v448_v6 = vrot.slane %v447_v4, 2 }
 0x26b   :  { %v442_v7 = vadd.f32 %v441_v5, %v440_v3  ;;  %v3582_v3 = vld [vmem:[#allocation13 + $0xe0] ss:$28 sps:$4 sm:$0xff]  }
 0x26c   :  { %v449_v8 = vadd.f32 %v448_v6, %v447_v4  ;;  %v3585_v4 = vld [vmem:[#allocation13 + $0xe8] ss:$28 sps:$4 sm:$0xff]   ;;  %v3590_v5 = vld [vmem:[#allocation13 + $0x11c] ss:$28 sps:$4 sm:$0xff]  }
 0x26d   :  { %v443_v9 = vrot.slane %v442_v7, 1  ;;  %v3593_v6 = vld [vmem:[#allocation13 + $0x124] ss:$28 sps:$4 sm:$0xff]  }
 0x26e   :  { %v450_v10 = vrot.slane %v449_v8, 1 }
 0x26f   :  { %v444_v11 = vadd.f32 %v443_v9, %v442_v7  ;;  %v3588_v7 = vld [vmem:[#allocation13 + $0x118] ss:$28 sps:$4 sm:$0xff]  }
 0x270   :  { %v451_v12 = vadd.f32 %v450_v10, %v449_v8  ;;  %v3591_v8 = vld [vmem:[#allocation13 + $0x120] ss:$28 sps:$4 sm:$0xff]   ;;  %v3596_v9 = vld [vmem:[#allocation13 + $0x154] ss:$28 sps:$4 sm:$0xff]  }
 0x271   :  { %v452_v13 = vmul.f32 0.125, %v444_v11  ;;  %v3599_v10 = vld [vmem:[#allocation13 + $0x15c] ss:$28 sps:$4 sm:$0xff]   ;;  %v3594_v11 = vld [vmem:[#allocation13 + $0x150] ss:$28 sps:$4 sm:$0xff]  }
 0x272   :  { %v453_v15 = vmul.f32 0.125, %v451_v12  ;;  %v3597_v12 = vld [vmem:[#allocation13 + $0x158] ss:$28 sps:$4 sm:$0xff]  }
 0x273   :  { %v454_v16 = vadd.f32 1e-05, %v452_v13  ;;  %v3602_v13 = vld [vmem:[#allocation13 + $0x18c] ss:$28 sps:$4 sm:$0xff]  }
 0x274   :  { %v455_v17 = vadd.f32 1e-05, %v453_v15  ;;  %v3600_v15 = vld [vmem:[#allocation13 + $0x188] ss:$28 sps:$4 sm:$0xff]  }
 0x275   :  { %3878 = vrsqrt.f32 %v454_v16  ;;  %v3603_v16 = vld [vmem:[#allocation13 + $0x190] ss:$28 sps:$4 sm:$0xff]  }
 0x276   :  { %3880 = vrsqrt.f32 %v455_v17  ;;  %v3608_v17 = vld [vmem:[#allocation13 + $0x1c4] ss:$28 sps:$4 sm:$0xff]  }
 0x27f   :  { %v3879_v24 = vpop.eup %3878 }
 0x280   :  { %v3881_v26 = vpop.eup %3880  ;;  %v458_v27 = vmul.f32 %v3879_v24, %v426_v59  ;;  %v460_v28 = vmul.f32 %v3879_v24, %v428_v60  ;;  %v3570_v59 = vld [vmem:[#allocation13 + $0x70] ss:$28 sps:$4 sm:$0xff]   ;;  %v3573_v60 = vld [vmem:[#allocation13 + $0x78] ss:$28 sps:$4 sm:$0xff]  }
 0x281   :  { %v459_v30 = vmul.f32 %v3881_v26, %v427_v61  ;;  %v461_v31 = vmul.f32 %v3881_v26, %v429_v62  ;;  %v3578_v61 = vld [vmem:[#allocation13 + $0xac] ss:$28 sps:$4 sm:$0xff]   ;;  %v3581_v62 = vld [vmem:[#allocation13 + $0xb4] ss:$28 sps:$4 sm:$0xff]   ;;  %v3614_v24 = vld [vmem:[#allocation13 + $0x1fc] ss:$28 sps:$4 sm:$0xff]  }
 0x282   :  { %v473_v33 = vmul.f32 %v466_v23, %v458_v27  ;;  %v475_v34 = vmul.f32 %v466_v23, %v460_v28  ;;  %v3609_v23 = vld [vmem:[#allocation13 + $0x1c8] ss:$28 sps:$4 sm:$0xff]   ;;  %v3612_v26 = vld [vmem:[#allocation13 + $0x1f8] ss:$28 sps:$4 sm:$0xff]   ;;  %v3615_v27 = vld [vmem:[#allocation13 + $0x200] ss:$28 sps:$4 sm:$0xff]  }
 0x283   :  { %v476_v35 = vmul.f32 %v470_v25, %v461_v31  ;;  %v474_v36 = vmul.f32 %v470_v25, %v459_v30  ;;  %v3617_v25 = vld [vmem:[#allocation13 + $0x204] ss:$28 sps:$4 sm:$0xff]   ;;  %v3620_v28 = vld [vmem:[#allocation13 + $0x234] ss:$28 sps:$4 sm:$0xff]  }
 0x284   :  { %v490_v37 = vadd.f32 %v481_v29, %v475_v34  ;;  %v488_v38 = vadd.f32 %v481_v29, %v473_v33  ;;  %v3623_v29 = vld [vmem:[#allocation13 + $0x23c] ss:$28 sps:$4 sm:$0xff]   ;;  %v3618_v30 = vld [vmem:[#allocation13 + $0x230] ss:$28 sps:$4 sm:$0xff]   ;;  %v3624_v34 = vld [vmem:[#allocation13 + $0x268] ss:$28 sps:$4 sm:$0xff]  }
 0x285   :  { %v489_v39 = vadd.f32 %v485_v32, %v474_v36  ;;  %v491_v40 = vadd.f32 %v485_v32, %v476_v35  ;;  %v3621_v31 = vld [vmem:[#allocation13 + $0x238] ss:$28 sps:$4 sm:$0xff]   ;;  %v3626_v32 = vld [vmem:[#allocation13 + $0x26c] ss:$28 sps:$4 sm:$0xff]   ;;  %v3632_v36 = vld [vmem:[#allocation13 + $0x2a4] ss:$28 sps:$4 sm:$0xff]  }
 0x286   :  { %v492_v41 = vmul.f32 0.2, %v488_v38  ;;  %v494_v42 = vmul.f32 0.2, %v490_v37  ;;  %v3629_v33 = vld [vmem:[#allocation13 + $0x274] ss:$28 sps:$4 sm:$0xff]  }
 0x287   :  { %v493_v43 = vmul.f32 0.2, %v489_v39  ;;  %v495_v44 = vmul.f32 0.2, %v491_v40  ;;  %v3627_v35 = vld [vmem:[#allocation13 + $0x270] ss:$28 sps:$4 sm:$0xff]  }
 0x288   :  { %v496_v45 = vmax.f32 %v488_v38, %v492_v41  ;;  %v498_v46 = vmax.f32 %v490_v37, %v494_v42  ;;  %v3635_v37 = vld [vmem:[#allocation13 + $0x2ac] ss:$28 sps:$4 sm:$0xff]   ;;  %v3630_v38 = vld [vmem:[#allocation13 + $0x2a0] ss:$28 sps:$4 sm:$0xff]   ;;  %v3636_v42 = vld [vmem:[#allocation13 + $0x2d8] ss:$28 sps:$4 sm:$0xff]  }
 0x289   :  { %v497_v47 = vmax.f32 %v489_v39, %v493_v43  ;;  %v499_v48 = vmax.f32 %v491_v40, %v495_v44  ;;  %v3633_v39 = vld [vmem:[#allocation13 + $0x2a8] ss:$28 sps:$4 sm:$0xff]   ;;  %v3638_v40 = vld [vmem:[#allocation13 + $0x2dc] ss:$28 sps:$4 sm:$0xff]   ;;  %v3644_v44 = vld [vmem:[#allocation13 + $0x314] ss:$28 sps:$4 sm:$0xff]  }
 0x28a   :  { %v500_v49 = vpack.c.bf16 %v498_v46, %v496_v45  ;;  %v3641_v41 = vld [vmem:[#allocation13 + $0x2e4] ss:$28 sps:$4 sm:$0xff]   ;;  %v3647_v45 = vld [vmem:[#allocation13 + $0x31c] ss:$28 sps:$4 sm:$0xff]   ;;  %v3642_v46 = vld [vmem:[#allocation13 + $0x310] ss:$28 sps:$4 sm:$0xff]  }
 0x28b   :  { %v501_v50 = vpack.c.bf16 %v499_v48, %v497_v47  ;;  %v3639_v43 = vld [vmem:[#allocation13 + $0x2e0] ss:$28 sps:$4 sm:$0xff]   ;;  %v3645_v47 = vld [vmem:[#allocation13 + $0x318] ss:$28 sps:$4 sm:$0xff]   ;;  %v3650_v48 = vld [vmem:[#allocation13 + $0x34c] ss:$28 sps:$4 sm:$0xff]  }
 0x28d   :  { %918 = vmatprep.mubr.bf16.mxu0 %v501_v50  ;;  %961 = vmatprep.mubr.bf16.mxu1 %v501_v50  ;;  %v3648_v50 = vld [vmem:[#allocation13 + $0x348] ss:$28 sps:$4 sm:$0xff]  }
 0x28e   :  { %919 = vmatmul.mubr.bf16.vlgmr.msra.gmra.mrb[0].mxu0 %v500_v49  ;;  %962 = vmatmul.mubr.bf16.vlgmr.msra.gmra.mrb[8].mxu1 %v500_v49  ;;  %v3653_v49 = vld [vmem:[#allocation13 + $0x354] ss:$28 sps:$4 sm:$0xff]  }
 0x28f   :  { %2610 = vmatpush1.bf16.msra.mxu0 %v3558_v51  ;;  %2696 = vmatpush1.bf16.msra.mxu1 %v3561_v52  ;;  %v3651_v51 = vld [vmem:[#allocation13 + $0x350] ss:$28 sps:$4 sm:$0xff]   ;;  %v3656_v52 = vld [vmem:[#allocation13 + $0x384] ss:$28 sps:$4 sm:$0xff]  }
 0x290   :  { %2611 = vmatprep.subr.bf16.mxu0 %v3566_v53  ;;  %2697 = vmatprep.subr.bf16.mxu1 %v3569_v54  ;;  %v3659_v53 = vld [vmem:[#allocation13 + $0x38c] ss:$28 sps:$4 sm:$0xff]  }
 0x293   :  { %2612 = vmatpush1.bf16.msra.mxu0 %v3564_v55  ;;  %2698 = vmatpush1.bf16.msra.mxu1 %v3567_v56 }
 0x294   :  { %2613 = vmatprep.subr.bf16.mxu0 %v3572_v57  ;;  %2699 = vmatprep.subr.bf16.mxu1 %v3575_v58 }
 0x297   :  { %2614 = vmatpush1.bf16.msra.mxu0 %v3570_v59  ;;  %2700 = vmatpush1.bf16.msra.mxu1 %v3573_v60 }
 0x298   :  { %2615 = vmatprep.subr.bf16.mxu0 %v3578_v61  ;;  %2701 = vmatprep.subr.bf16.mxu1 %v3581_v62 }
 0x29b   :  { %2616 = vmatpush1.bf16.msra.mxu0 %v3576_v63  ;;  %2702 = vmatpush1.bf16.msra.mxu1 %v3579_v0 }
 0x29c   :  { %2617 = vmatprep.subr.bf16.mxu0 %v3584_v1  ;;  %2703 = vmatprep.subr.bf16.mxu1 %v3587_v2 }
 0x29f   :  { %2618 = vmatpush1.bf16.msra.mxu0 %v3582_v3  ;;  %2704 = vmatpush1.bf16.msra.mxu1 %v3585_v4 }
 0x2a0   :  { %2619 = vmatprep.subr.bf16.mxu0 %v3590_v5  ;;  %2705 = vmatprep.subr.bf16.mxu1 %v3593_v6 }
 0x2a3   :  { %2620 = vmatpush1.bf16.msra.mxu0 %v3588_v7  ;;  %2706 = vmatpush1.bf16.msra.mxu1 %v3591_v8 }
 0x2a4   :  { %2621 = vmatprep.subr.bf16.mxu0 %v3596_v9  ;;  %2707 = vmatprep.subr.bf16.mxu1 %v3599_v10 }
 0x2a7   :  { %2622 = vmatpush1.bf16.msra.mxu0 %v3594_v11  ;;  %2708 = vmatpush1.bf16.msra.mxu1 %v3597_v12 }
 0x2a8   :  { %2623 = vmatprep.subr.bf16.mxu0 %v3602_v13  ;;  %2709 = vmatprep.subr.bf16.mxu1 %v3605_v14 }
 0x2ab   :  { %2624 = vmatpush1.bf16.msra.mxu0 %v3600_v15  ;;  %2710 = vmatpush1.bf16.msra.mxu1 %v3603_v16 }
 0x2ac   :  { %2625 = vmatprep.subr.bf16.mxu0 %v3608_v17  ;;  %2711 = vmatprep.subr.bf16.mxu1 %v3611_v20 }
 0x2af   :  { %2626 = vmatpush1.bf16.msra.mxu0 %v3606_v22  ;;  %2712 = vmatpush1.bf16.msra.mxu1 %v3609_v23 }
 0x2b0   :  { %2627 = vmatprep.subr.bf16.mxu0 %v3614_v24  ;;  %2713 = vmatprep.subr.bf16.mxu1 %v3617_v25 }
 0x2b3   :  { %2628 = vmatpush1.bf16.msra.mxu0 %v3612_v26  ;;  %2714 = vmatpush1.bf16.msra.mxu1 %v3615_v27 }
 0x2b4   :  { %2629 = vmatprep.subr.bf16.mxu0 %v3620_v28  ;;  %2715 = vmatprep.subr.bf16.mxu1 %v3623_v29 }
 0x2b7   :  { %2630 = vmatpush1.bf16.msra.mxu0 %v3618_v30  ;;  %2716 = vmatpush1.bf16.msra.mxu1 %v3621_v31 }
 0x2b8   :  { %2631 = vmatprep.subr.bf16.mxu0 %v3626_v32  ;;  %2717 = vmatprep.subr.bf16.mxu1 %v3629_v33 }
 0x2bb   :  { %2632 = vmatpush1.bf16.msra.mxu0 %v3624_v34  ;;  %2718 = vmatpush1.bf16.msra.mxu1 %v3627_v35 }
 0x2bc   :  { %2633 = vmatprep.subr.bf16.mxu0 %v3632_v36  ;;  %2719 = vmatprep.subr.bf16.mxu1 %v3635_v37 }
 0x2bf   :  { %2634 = vmatpush1.bf16.msra.mxu0 %v3630_v38  ;;  %2720 = vmatpush1.bf16.msra.mxu1 %v3633_v39 }
 0x2c0   :  { %2635 = vmatprep.subr.bf16.mxu0 %v3638_v40  ;;  %2721 = vmatprep.subr.bf16.mxu1 %v3641_v41 }
 0x2c3   :  { %2636 = vmatpush1.bf16.msra.mxu0 %v3636_v42  ;;  %2722 = vmatpush1.bf16.msra.mxu1 %v3639_v43 }
 0x2c4   :  { %2637 = vmatprep.subr.bf16.mxu0 %v3644_v44  ;;  %2723 = vmatprep.subr.bf16.mxu1 %v3647_v45 }
 0x2c7   :  { %2638 = vmatpush1.bf16.msra.mxu0 %v3642_v46  ;;  %2724 = vmatpush1.bf16.msra.mxu1 %v3645_v47 }
 0x2c8   :  { %2639 = vmatprep.subr.bf16.mxu0 %v3650_v48  ;;  %2725 = vmatprep.subr.bf16.mxu1 %v3653_v49 }
 0x2cb   :  { %2640 = vmatpush1.bf16.msra.mxu0 %v3648_v50  ;;  %2726 = vmatpush1.bf16.msra.mxu1 %v3651_v51 }
 0x2cc   :  { %2652 = vmatprep.subr.bf16.mxu0 %v3656_v52  ;;  %2738 = vmatprep.subr.bf16.mxu1 %v3659_v53 }
 0x361   :  { %v920_v54 = vpop.f32.mrb[0].mxu0  ;;  %v963_v55 = vpop.f32.mrb[8].mxu1 }
 0x362   :  { %v983_v56 = vrot.slane %v920_v54, 4  ;;  %v997_v57 = vrot.slane %v963_v55, 4  ;;  %v922_v58 = vpop.f32.mrb[1].mxu0  ;;  %v965_v59 = vpop.f32.mrb[9].mxu1 }
 0x363   :  { %v990_v60 = vrot.slane %v922_v58, 4  ;;  %v1004_v61 = vrot.slane %v965_v59, 4  ;;  %v4297_v62 = vpop.f32.mrb[2].mxu0  ;;  %v4299_v63 = vpop.f32.mrb[10].mxu1 }
 0x364   :  { %v984_v0 = vadd.f32 %v983_v56, %v920_v54  ;;  %v998_v1 = vadd.f32 %v997_v57, %v963_v55  ;;  %v4301_v2 = vpop.f32.mrb[3].mxu0  ;;  %v4303_v3 = vpop.f32.mrb[11].mxu1 }
 0x365   :  { %v991_v4 = vadd.f32 %v990_v60, %v922_v58  ;;  %v1005_v5 = vadd.f32 %v1004_v61, %v965_v59 }
 0x366   :  { %v985_v6 = vrot.slane %v984_v0, 2  ;;  %v999_v7 = vrot.slane %v998_v1, 2 }
 0x367   :  { %v992_v8 = vrot.slane %v991_v4, 2  ;;  %v1006_v9 = vrot.slane %v1005_v5, 2 }
 0x368   :  { %v986_v10 = vadd.f32 %v985_v6, %v984_v0  ;;  %v1000_v11 = vadd.f32 %v999_v7, %v998_v1 }
 0x369   :  { %v993_v12 = vadd.f32 %v992_v8, %v991_v4  ;;  %v1007_v13 = vadd.f32 %v1006_v9, %v1005_v5 }
 0x36a   :  { %v987_v14 = vrot.slane %v986_v10, 1  ;;  %v1001_v15 = vrot.slane %v1000_v11, 1 }
 0x36b   :  { %v994_v16 = vrot.slane %v993_v12, 1  ;;  %v1008_v17 = vrot.slane %v1007_v13, 1 }
 0x36c   :  { %v988_v20 = vadd.f32 %v987_v14, %v986_v10  ;;  %v1002_v22 = vadd.f32 %v1001_v15, %v1000_v11  ;;  %v972_v11 = vld [vmem:[%s4423_s7] sm:$0xf]  ;;  %v4343_v14 = vsub.s32 3, %v4282_v18 }
 0x36d   :  { %v995_v23 = vadd.f32 %v994_v16, %v993_v12  ;;  %v1009_v24 = vadd.f32 %v1008_v17, %v1007_v13  ;;  %v4337_v12 = vsub.s32 2, %v4282_v18  ;;  %v973_v13 = vld [vmem:[%s4424_s8] sm:$0xf]  ;;  %v1090_v15 = vrot.slane %v972_v11, %v4285_v19 }
 0x36e   :  { %v4305_v25 = vmul.f32 0.125, %v988_v20  ;;  %v4307_v26 = vmul.f32 0.125, %v1002_v22  ;;  %v1119_v17 = vrot.slane %v973_v13, %v4285_v19  ;;  %v1094_v22 = vrot.slane %v972_v11, %v4288_v21 }
 0x36f   :  { %v4309_v27 = vmul.f32 0.125, %v995_v23  ;;  %v4311_v28 = vmul.f32 0.125, %v1009_v24  ;;  %v1098_v20 = vrot.slane %v972_v11, %v4337_v12 }
 0x370   :  { %v1014_v29 = vsub.f32 %v920_v54, %v4305_v25  ;;  %v1018_v30 = vsub.f32 %v4297_v62, %v4305_v25  ;;  %v1016_v31 = vsub.f32 %v963_v55, %v4307_v26  ;;  %v1020_v32 = vsub.f32 %v4299_v63, %v4307_v26 }
 0x371   :  { %v4320_v33 = vsub.f32 %v922_v58, %v4309_v27  ;;  %v1019_v34 = vsub.f32 %v4301_v2, %v4309_v27  ;;  %v4325_v35 = vsub.f32 %v965_v59, %v4311_v28  ;;  %v1021_v36 = vsub.f32 %v4303_v3, %v4311_v28 }
 0x372   :  { %v1030_v37 = vmul.f32 %v1014_v29, %v1014_v29  ;;  %v1032_v38 = vmul.f32 %v1016_v31, %v1016_v31  ;;  %v1127_v26 = vrot.slane %v973_v13, %v4337_v12 }
 0x373   :  { %v1031_v39 = vmul.f32 %v4320_v33, %v4320_v33  ;;  %v1033_v40 = vmul.f32 %v4325_v35, %v4325_v35 }
 0x374   :  { %v1039_v41 = vrot.slane %v1030_v37, 4  ;;  %v1053_v42 = vrot.slane %v1032_v38, 4 }
 0x375   :  { %v1046_v43 = vrot.slane %v1031_v39, 4  ;;  %v1060_v44 = vrot.slane %v1033_v40, 4 }
 0x376   :  { %v1040_v45 = vadd.f32 %v1039_v41, %v1030_v37  ;;  %v1054_v46 = vadd.f32 %v1053_v42, %v1032_v38  ;;  %v1102_v37 = vrot.slane %v972_v11, %v4343_v14  ;;  %v1123_v41 = vrot.slane %v973_v13, %v4288_v21 }
 0x377   :  { %v1047_v47 = vadd.f32 %v1046_v43, %v1031_v39  ;;  %v1061_v48 = vadd.f32 %v1060_v44, %v1033_v40  ;;  %v1131_v42 = vrot.slane %v973_v13, %v4343_v14  ;;  %v3662_v13 = vld [vmem:[#allocation13 + $0x3bc] ss:$28 sps:$4 sm:$0xff]  }
 0x378   :  { %v1041_v49 = vrot.slane %v1040_v45, 2  ;;  %v1055_v50 = vrot.slane %v1054_v46, 2 }
 0x379   :  { %v1048_v51 = vrot.slane %v1047_v47, 2  ;;  %v1062_v52 = vrot.slane %v1061_v48, 2 }
 0x37a   :  { %v1042_v53 = vadd.f32 %v1041_v49, %v1040_v45  ;;  %v1056_v54 = vadd.f32 %v1055_v50, %v1054_v46 }
 0x37b   :  { %v1049_v55 = vadd.f32 %v1048_v51, %v1047_v47  ;;  %v1063_v56 = vadd.f32 %v1062_v52, %v1061_v48 }
 0x37c   :  { %v1043_v57 = vrot.slane %v1042_v53, 1  ;;  %v1057_v58 = vrot.slane %v1056_v54, 1 }
 0x37d   :  { %v1050_v59 = vrot.slane %v1049_v55, 1  ;;  %v1064_v60 = vrot.slane %v1063_v56, 1 }
 0x37e   :  { %v1044_v61 = vadd.f32 %v1043_v57, %v1042_v53  ;;  %v1058_v62 = vadd.f32 %v1057_v58, %v1056_v54 }
 0x37f   :  { %v1051_v63 = vadd.f32 %v1050_v59, %v1049_v55  ;;  %v1065_v0 = vadd.f32 %v1064_v60, %v1063_v56 }
 0x380   :  { %v1066_v1 = vmul.f32 0.125, %v1044_v61  ;;  %v1068_v4 = vmul.f32 0.125, %v1058_v62 }
 0x381   :  { %v1067_v5 = vmul.f32 0.125, %v1051_v63  ;;  %v1069_v6 = vmul.f32 0.125, %v1065_v0 }
 0x382   :  { %v1070_v7 = vadd.f32 1e-05, %v1066_v1  ;;  %v1072_v8 = vadd.f32 1e-05, %v1068_v4 }
 0x383   :  { %v1071_v9 = vadd.f32 1e-05, %v1067_v5  ;;  %v1073_v10 = vadd.f32 1e-05, %v1069_v6 }
 0x384   :  { %3882 = vrsqrt.f32 %v1070_v7 }
 0x385   :  { %3884 = vrsqrt.f32 %v1072_v8 }
 0x386   :  { %3886 = vrsqrt.f32 %v1071_v9  ;;  %v3654_v9 = vld [vmem:[#allocation13 + $0x380] ss:$28 sps:$4 sm:$0xff]  }
 0x387   :  { %3888 = vrsqrt.f32 %v1073_v10  ;;  %v3657_v10 = vld [vmem:[#allocation13 + $0x388] ss:$28 sps:$4 sm:$0xff]  }
 0x38e   :  { %v3883_v16 = vpop.eup %3882 }
 0x38f   :  { %v3885_v23 = vpop.eup %3884  ;;  %v1078_v24 = vmul.f32 %v3883_v16, %v1014_v29  ;;  %v1082_v25 = vmul.f32 %v3883_v16, %v1018_v30  ;;  %v3660_v16 = vld [vmem:[#allocation13 + $0x3b8] ss:$28 sps:$4 sm:$0xff]  }
 0x390   :  { %v3887_v38 = vpop.eup %3886  ;;  %v1080_v39 = vmul.f32 %v3885_v23, %v1016_v31  ;;  %v1084_v40 = vmul.f32 %v3885_v23, %v1020_v32  ;;  %v3666_v23 = vld [vmem:[#allocation13 + $0x3f0] ss:$28 sps:$4 sm:$0xff]  }
 0x391   :  { %v3889_v43 = vpop.eup %3888  ;;  %v1107_v44 = vmul.f32 %v1090_v15, %v1078_v24  ;;  %v1111_v45 = vmul.f32 %v1090_v15, %v1082_v25  ;;  %v1079_v46 = vmul.f32 %v3887_v38, %v4320_v33  ;;  %v1083_v29 = vmul.f32 %v3887_v38, %v1019_v34  ;;  %v3665_v15 = vld [vmem:[#allocation13 + $0x3c4] ss:$28 sps:$4 sm:$0xff]   ;;  %v3669_v24 = vld [vmem:[#allocation13 + $0x3f8] ss:$28 sps:$4 sm:$0xff]   ;;  %v3674_v25 = vld [vmem:[#allocation13 + $0x42c] ss:$28 sps:$4 sm:$0xff]  }
 0x392   :  { %v1109_v30 = vmul.f32 %v1098_v20, %v1080_v39  ;;  %v1113_v47 = vmul.f32 %v1098_v20, %v1084_v40  ;;  %v1081_v48 = vmul.f32 %v3889_v43, %v4325_v35  ;;  %v1085_v31 = vmul.f32 %v3889_v43, %v1021_v36  ;;  %v3668_v20 = vld [vmem:[#allocation13 + $0x3f4] ss:$28 sps:$4 sm:$0xff]   ;;  %v3680_v39 = vld [vmem:[#allocation13 + $0x464] ss:$28 sps:$4 sm:$0xff]   ;;  %v3683_v40 = vld [vmem:[#allocation13 + $0x46c] ss:$28 sps:$4 sm:$0xff]  }
 0x393   :  { %v1136_v32 = vadd.f32 %v1119_v17, %v1107_v44  ;;  %v1140_v49 = vadd.f32 %v1119_v17, %v1111_v45  ;;  %v1108_v50 = vmul.f32 %v1094_v22, %v1079_v46  ;;  %v1112_v51 = vmul.f32 %v1094_v22, %v1083_v29  ;;  %v3663_v17 = vld [vmem:[#allocation13 + $0x3c0] ss:$28 sps:$4 sm:$0xff]   ;;  %v3675_v38 = vld [vmem:[#allocation13 + $0x430] ss:$28 sps:$4 sm:$0xff]   ;;  %v3684_v45 = vld [vmem:[#allocation13 + $0x498] ss:$28 sps:$4 sm:$0xff]  }
 0x394   :  { %v1138_v52 = vadd.f32 %v1127_v26, %v1109_v30  ;;  %v1142_v53 = vadd.f32 %v1127_v26, %v1113_v47  ;;  %v1110_v54 = vmul.f32 %v1102_v37, %v1081_v48  ;;  %v1114_v33 = vmul.f32 %v1102_v37, %v1085_v31  ;;  %v3671_v22 = vld [vmem:[#allocation13 + $0x3fc] ss:$28 sps:$4 sm:$0xff]   ;;  %v3677_v26 = vld [vmem:[#allocation13 + $0x434] ss:$28 sps:$4 sm:$0xff]   ;;  %v3672_v37 = vld [vmem:[#allocation13 + $0x428] ss:$28 sps:$4 sm:$0xff]  }
 0x395   :  { %v1148_v55 = vmul.f32 0.2, %v1140_v49  ;;  %v1137_v56 = vadd.f32 %v1123_v41, %v1108_v50  ;;  %v1141_v2 = vadd.f32 %v1123_v41, %v1112_v51  ;;  %v1144_v27 = vmul.f32 0.2, %v1136_v32  ;;  %v3678_v41 = vld [vmem:[#allocation13 + $0x460] ss:$28 sps:$4 sm:$0xff]  }
 0x396   :  { %v1150_v34 = vmul.f32 0.2, %v1142_v53  ;;  %v1139_v57 = vadd.f32 %v1131_v42, %v1110_v54  ;;  %v1143_v58 = vadd.f32 %v1131_v42, %v1114_v33  ;;  %v1146_v35 = vmul.f32 0.2, %v1138_v52  ;;  %v3681_v42 = vld [vmem:[#allocation13 + $0x468] ss:$28 sps:$4 sm:$0xff]  }
 0x397   :  { %v1156_v59 = vmax.f32 %v1140_v49, %v1148_v55  ;;  %v1149_v60 = vmul.f32 0.2, %v1141_v2  ;;  %v1145_v3 = vmul.f32 0.2, %v1137_v56  ;;  %v1152_v28 = vmax.f32 %v1136_v32, %v1144_v27  ;;  %v3686_v43 = vld [vmem:[#allocation13 + $0x49c] ss:$28 sps:$4 sm:$0xff]  }
 0x398   :  { %v1158_v36 = vmax.f32 %v1142_v53, %v1150_v34  ;;  %v1151_v61 = vmul.f32 0.2, %v1143_v58  ;;  %v1147_v62 = vmul.f32 0.2, %v1139_v57  ;;  %v1154_v63 = vmax.f32 %v1138_v52, %v1146_v35  ;;  %v3689_v44 = vld [vmem:[#allocation13 + $0x4a4] ss:$28 sps:$4 sm:$0xff]  }
 0x399   :  { %v1157_v0 = vmax.f32 %v1141_v2, %v1149_v60  ;;  %v1153_v1 = vmax.f32 %v1137_v56, %v1145_v3  ;;  %v4361_v4 = vpack.c.bf16 %v1156_v59, %v1152_v28  ;;  %v3687_v46 = vld [vmem:[#allocation13 + $0x4a0] ss:$28 sps:$4 sm:$0xff]   ;;  %v3692_v29 = vld [vmem:[#allocation13 + $0x4d4] ss:$28 sps:$4 sm:$0xff]   ;;  %v3698_v31 = vld [vmem:[#allocation13 + $0x50c] ss:$28 sps:$4 sm:$0xff]  }
 0x39a   :  { %v1159_v5 = vmax.f32 %v1143_v58, %v1151_v61  ;;  %v1155_v6 = vmax.f32 %v1139_v57, %v1147_v62  ;;  %v4363_v7 = vpack.c.bf16 %v1158_v36, %v1154_v63  ;;  %v3695_v30 = vld [vmem:[#allocation13 + $0x4dc] ss:$28 sps:$4 sm:$0xff]   ;;  %v3690_v47 = vld [vmem:[#allocation13 + $0x4d0] ss:$28 sps:$4 sm:$0xff]   ;;  %v3696_v49 = vld [vmem:[#allocation13 + $0x508] ss:$28 sps:$4 sm:$0xff]  }
 0x39b   :  { %v4365_v8 = vpack.c.bf16 %v1157_v0, %v1153_v1  ;;  %v3693_v48 = vld [vmem:[#allocation13 + $0x4d8] ss:$28 sps:$4 sm:$0xff]   ;;  %v3699_v50 = vld [vmem:[#allocation13 + $0x510] ss:$28 sps:$4 sm:$0xff]   ;;  %v3704_v51 = vld [vmem:[#allocation13 + $0x544] ss:$28 sps:$4 sm:$0xff]  }
 0x39c   :  { %v4367_v11 = vpack.c.bf16 %v1159_v5, %v1155_v6  ;;  %v3701_v32 = vld [vmem:[#allocation13 + $0x514] ss:$28 sps:$4 sm:$0xff]   ;;  %v3707_v52 = vld [vmem:[#allocation13 + $0x54c] ss:$28 sps:$4 sm:$0xff]   ;;  %v3702_v53 = vld [vmem:[#allocation13 + $0x540] ss:$28 sps:$4 sm:$0xff]  }
 0x39d   :  { %2641 = vmatprep.mubr.bf16.mxu0 %v4365_v8  ;;  %2727 = vmatprep.mubr.bf16.mxu1 %v4365_v8  ;;  %v3705_v54 = vld [vmem:[#allocation13 + $0x548] ss:$28 sps:$4 sm:$0xff]   ;;  %v3710_v33 = vld [vmem:[#allocation13 + $0x57c] ss:$28 sps:$4 sm:$0xff]   ;;  %v3716_v27 = vld [vmem:[#allocation13 + $0x5b4] ss:$28 sps:$4 sm:$0xff]  }
 0x39e   :  { %2642 = vmatmul.mubr.bf16.vlgmr.msra.gmra.mrb[4].mxu0 %v4361_v4  ;;  %2728 = vmatmul.mubr.bf16.vlgmr.msra.gmra.mrb[12].mxu1 %v4361_v4  ;;  %v3713_v55 = vld [vmem:[#allocation13 + $0x584] ss:$28 sps:$4 sm:$0xff]   ;;  %v3708_v56 = vld [vmem:[#allocation13 + $0x578] ss:$28 sps:$4 sm:$0xff]   ;;  %v3714_v57 = vld [vmem:[#allocation13 + $0x5b0] ss:$28 sps:$4 sm:$0xff]  }
 0x39f   :  { %2653 = vmatpush1.bf16.msra.mxu0 %v3654_v9  ;;  %2739 = vmatpush1.bf16.msra.mxu1 %v3657_v10  ;;  %v3711_v2 = vld [vmem:[#allocation13 + $0x580] ss:$28 sps:$4 sm:$0xff]   ;;  %v3717_v58 = vld [vmem:[#allocation13 + $0x5b8] ss:$28 sps:$4 sm:$0xff]   ;;  %v3722_v35 = vld [vmem:[#allocation13 + $0x5ec] ss:$28 sps:$4 sm:$0xff]  }
 0x3a0   :  { %2684 = vmatprep.mubr.bf16.mxu0 %v4367_v11  ;;  %2770 = vmatprep.mubr.bf16.mxu1 %v4367_v11  ;;  %v3719_v34 = vld [vmem:[#allocation13 + $0x5bc] ss:$28 sps:$4 sm:$0xff]   ;;  %v3725_v59 = vld [vmem:[#allocation13 + $0x5f4] ss:$28 sps:$4 sm:$0xff]   ;;  %v3720_v60 = vld [vmem:[#allocation13 + $0x5e8] ss:$28 sps:$4 sm:$0xff]  }
 0x3a1   :  { %2654 = vmatprep.subr.bf16.mxu0 %v3662_v13  ;;  %2740 = vmatprep.subr.bf16.mxu1 %v3665_v15  ;;  %v3723_v3 = vld [vmem:[#allocation13 + $0x5f0] ss:$28 sps:$4 sm:$0xff]   ;;  %v3728_v28 = vld [vmem:[#allocation13 + $0x624] ss:$28 sps:$4 sm:$0xff]   ;;  %v3734_v63 = vld [vmem:[#allocation13 + $0x65c] ss:$28 sps:$4 sm:$0xff]  }
 0x3a2   :  { %v3731_v36 = vld [vmem:[#allocation13 + $0x62c] ss:$28 sps:$4 sm:$0xff]   ;;  %v3726_v61 = vld [vmem:[#allocation13 + $0x620] ss:$28 sps:$4 sm:$0xff]   ;;  %v3732_v1 = vld [vmem:[#allocation13 + $0x658] ss:$28 sps:$4 sm:$0xff]  }
 0x3a3   :  { %2655 = vmatpush1.bf16.msra.mxu0 %v3660_v16  ;;  %2741 = vmatpush1.bf16.msra.mxu1 %v3663_v17  ;;  %v3729_v62 = vld [vmem:[#allocation13 + $0x628] ss:$28 sps:$4 sm:$0xff]   ;;  %v3735_v5 = vld [vmem:[#allocation13 + $0x660] ss:$28 sps:$4 sm:$0xff]   ;;  %v3740_v6 = vld [vmem:[#allocation13 + $0x694] ss:$28 sps:$4 sm:$0xff]  }
 0x3a4   :  { %2656 = vmatprep.subr.bf16.mxu0 %v3668_v20  ;;  %2742 = vmatprep.subr.bf16.mxu1 %v3671_v22  ;;  %v3737_v0 = vld [vmem:[#allocation13 + $0x664] ss:$28 sps:$4 sm:$0xff]   ;;  %v3743_v9 = vld [vmem:[#allocation13 + $0x69c] ss:$28 sps:$4 sm:$0xff]   ;;  %v3738_v10 = vld [vmem:[#allocation13 + $0x690] ss:$28 sps:$4 sm:$0xff]  }
 0x3a5   :  { %v3741_v13 = vld [vmem:[#allocation13 + $0x698] ss:$28 sps:$4 sm:$0xff]   ;;  %v3746_v15 = vld [vmem:[#allocation13 + $0x6cc] ss:$28 sps:$4 sm:$0xff]  }
 0x3a6   :  { %v3749_v16 = vld [vmem:[#allocation13 + $0x6d4] ss:$28 sps:$4 sm:$0xff]   ;;  %v3744_v17 = vld [vmem:[#allocation13 + $0x6c8] ss:$28 sps:$4 sm:$0xff]  }
 0x3a7   :  { %2657 = vmatpush1.bf16.msra.mxu0 %v3666_v23  ;;  %2743 = vmatpush1.bf16.msra.mxu1 %v3669_v24  ;;  %v3747_v20 = vld [vmem:[#allocation13 + $0x6d0] ss:$28 sps:$4 sm:$0xff]   ;;  %v3753_v23 = vld [vmem:[#allocation13 + $0x1d8] ss:$28 sps:$4 sm:$0xff]  }
 0x3a8   :  { %2658 = vmatprep.subr.bf16.mxu0 %v3674_v25  ;;  %2744 = vmatprep.subr.bf16.mxu1 %v3677_v26  ;;  %v3752_v22 = vld [vmem:[#allocation13 + $0x14] ss:$28 sps:$4 sm:$0xff]   ;;  %v3757_v26 = vld [vmem:[#allocation13 + $0x4c] ss:$28 sps:$4 sm:$0xff]  }
 0x3a9   :  { %v3750_v24 = vld [vmem:[#allocation13 + $0x10] ss:$28 sps:$4 sm:$0xff]   ;;  %v3754_v25 = vld [vmem:[#allocation13 + $0x18] ss:$28 sps:$4 sm:$0xff]  }
 0x3ab   :  { %2659 = vmatpush1.bf16.msra.mxu0 %v3672_v37  ;;  %2745 = vmatpush1.bf16.msra.mxu1 %v3675_v38  ;;  %v3758_v37 = vld [vmem:[#allocation13 + $0x210] ss:$28 sps:$4 sm:$0xff]   ;;  %v3755_v38 = vld [vmem:[#allocation13 + $0x48] ss:$28 sps:$4 sm:$0xff]  }
 0x3ac   :  { %2660 = vmatprep.subr.bf16.mxu0 %v3680_v39  ;;  %2746 = vmatprep.subr.bf16.mxu1 %v3683_v40  ;;  %v3759_v39 = vld [vmem:[#allocation13 + $0x50] ss:$28 sps:$4 sm:$0xff]   ;;  %v3762_v40 = vld [vmem:[#allocation13 + $0x84] ss:$28 sps:$4 sm:$0xff]  }
 0x3af   :  { %2661 = vmatpush1.bf16.msra.mxu0 %v3678_v41  ;;  %2747 = vmatpush1.bf16.msra.mxu1 %v3681_v42  ;;  %v3763_v41 = vld [vmem:[#allocation13 + $0x248] ss:$28 sps:$4 sm:$0xff]   ;;  %v3760_v42 = vld [vmem:[#allocation13 + $0x80] ss:$28 sps:$4 sm:$0xff]  }
 0x3b0   :  { %2662 = vmatprep.subr.bf16.mxu0 %v3686_v43  ;;  %2748 = vmatprep.subr.bf16.mxu1 %v3689_v44  ;;  %v3764_v43 = vld [vmem:[#allocation13 + $0x88] ss:$28 sps:$4 sm:$0xff]   ;;  %v3767_v44 = vld [vmem:[#allocation13 + $0xbc] ss:$28 sps:$4 sm:$0xff]  }
 0x3b3   :  { %2663 = vmatpush1.bf16.msra.mxu0 %v3684_v45  ;;  %2749 = vmatpush1.bf16.msra.mxu1 %v3687_v46  ;;  %v3768_v45 = vld [vmem:[#allocation13 + $0x280] ss:$28 sps:$4 sm:$0xff]   ;;  %v3765_v46 = vld [vmem:[#allocation13 + $0xb8] ss:$28 sps:$4 sm:$0xff]  }
 0x3b4   :  { %2664 = vmatprep.subr.bf16.mxu0 %v3692_v29  ;;  %2750 = vmatprep.subr.bf16.mxu1 %v3695_v30  ;;  %v3769_v29 = vld [vmem:[#allocation13 + $0xc0] ss:$28 sps:$4 sm:$0xff]   ;;  %v3772_v30 = vld [vmem:[#allocation13 + $0xf4] ss:$28 sps:$4 sm:$0xff]  }
 0x3b7   :  { %2665 = vmatpush1.bf16.msra.mxu0 %v3690_v47  ;;  %2751 = vmatpush1.bf16.msra.mxu1 %v3693_v48  ;;  %v3770_v47 = vld [vmem:[#allocation13 + $0xf0] ss:$28 sps:$4 sm:$0xff]   ;;  %v3774_v48 = vld [vmem:[#allocation13 + $0xf8] ss:$28 sps:$4 sm:$0xff]  }
 0x3b8   :  { %2666 = vmatprep.subr.bf16.mxu0 %v3698_v31  ;;  %2752 = vmatprep.subr.bf16.mxu1 %v3701_v32  ;;  %v3777_v31 = vld [vmem:[#allocation13 + $0x12c] ss:$28 sps:$4 sm:$0xff]  }
 0x3b9   :  { %v3778_v32 = vld [vmem:[#allocation13 + $0x2f0] ss:$28 sps:$4 sm:$0xff]  }
 0x3bb   :  { %2667 = vmatpush1.bf16.msra.mxu0 %v3696_v49  ;;  %2753 = vmatpush1.bf16.msra.mxu1 %v3699_v50  ;;  %v3775_v49 = vld [vmem:[#allocation13 + $0x128] ss:$28 sps:$4 sm:$0xff]   ;;  %v3779_v50 = vld [vmem:[#allocation13 + $0x130] ss:$28 sps:$4 sm:$0xff]  }
 0x3bc   :  { %2668 = vmatprep.subr.bf16.mxu0 %v3704_v51  ;;  %2754 = vmatprep.subr.bf16.mxu1 %v3707_v52  ;;  %v3782_v51 = vld [vmem:[#allocation13 + $0x164] ss:$28 sps:$4 sm:$0xff]  }
 0x3bd   :  { %v3783_v52 = vld [vmem:[#allocation13 + $0x328] ss:$28 sps:$4 sm:$0xff]  }
 0x3bf   :  { %2669 = vmatpush1.bf16.msra.mxu0 %v3702_v53  ;;  %2755 = vmatpush1.bf16.msra.mxu1 %v3705_v54  ;;  %v3780_v53 = vld [vmem:[#allocation13 + $0x160] ss:$28 sps:$4 sm:$0xff]   ;;  %v3784_v54 = vld [vmem:[#allocation13 + $0x168] ss:$28 sps:$4 sm:$0xff]  }
 0x3c0   :  { %2670 = vmatprep.subr.bf16.mxu0 %v3710_v33  ;;  %2756 = vmatprep.subr.bf16.mxu1 %v3713_v55  ;;  %v3787_v33 = vld [vmem:[#allocation13 + $0x19c] ss:$28 sps:$4 sm:$0xff]  }
 0x3c1   :  { %v3788_v55 = vld [vmem:[#allocation13 + $0x360] ss:$28 sps:$4 sm:$0xff]  }
 0x3c3   :  { %2671 = vmatpush1.bf16.msra.mxu0 %v3708_v56  ;;  %2757 = vmatpush1.bf16.msra.mxu1 %v3711_v2  ;;  %v3785_v56 = vld [vmem:[#allocation13 + $0x198] ss:$28 sps:$4 sm:$0xff]   ;;  %v3789_v2 = vld [vmem:[#allocation13 + $0x1a0] ss:$28 sps:$4 sm:$0xff]  }
 0x3c4   :  { %2672 = vmatprep.subr.bf16.mxu0 %v3716_v27  ;;  %2758 = vmatprep.subr.bf16.mxu1 %v3719_v34  ;;  %v3792_v27 = vld [vmem:[#allocation13 + $0x1d4] ss:$28 sps:$4 sm:$0xff]  }
 0x3c5   :  { %v3793_v34 = vld [vmem:[#allocation13 + $0x558] ss:$28 sps:$4 sm:$0xff]  }
 0x3c7   :  { %2673 = vmatpush1.bf16.msra.mxu0 %v3714_v57  ;;  %2759 = vmatpush1.bf16.msra.mxu1 %v3717_v58  ;;  %v3790_v57 = vld [vmem:[#allocation13 + $0x1d0] ss:$28 sps:$4 sm:$0xff]   ;;  %v3794_v58 = vld [vmem:[#allocation13 + $0x398] ss:$28 sps:$4 sm:$0xff]  }
 0x3c8   :  { %2674 = vmatprep.subr.bf16.mxu0 %v3722_v35  ;;  %2760 = vmatprep.subr.bf16.mxu1 %v3725_v59  ;;  %v3797_v35 = vld [vmem:[#allocation13 + $0x20c] ss:$28 sps:$4 sm:$0xff]  }
 0x3c9   :  { %v3798_v59 = vld [vmem:[#allocation13 + $0x590] ss:$28 sps:$4 sm:$0xff]  }
 0x3cb   :  { %2675 = vmatpush1.bf16.msra.mxu0 %v3720_v60  ;;  %2761 = vmatpush1.bf16.msra.mxu1 %v3723_v3  ;;  %v3795_v60 = vld [vmem:[#allocation13 + $0x208] ss:$28 sps:$4 sm:$0xff]   ;;  %v3799_v3 = vld [vmem:[#allocation13 + $0x3d0] ss:$28 sps:$4 sm:$0xff]  }
 0x3cc   :  { %2676 = vmatprep.subr.bf16.mxu0 %v3728_v28  ;;  %2762 = vmatprep.subr.bf16.mxu1 %v3731_v36  ;;  %v3802_v28 = vld [vmem:[#allocation13 + $0x244] ss:$28 sps:$4 sm:$0xff]  }
 0x3cd   :  { %v3803_v36 = vld [vmem:[#allocation13 + $0x5c8] ss:$28 sps:$4 sm:$0xff]  }
 0x3cf   :  { %2677 = vmatpush1.bf16.msra.mxu0 %v3726_v61  ;;  %2763 = vmatpush1.bf16.msra.mxu1 %v3729_v62  ;;  %v3800_v61 = vld [vmem:[#allocation13 + $0x240] ss:$28 sps:$4 sm:$0xff]   ;;  %v3804_v62 = vld [vmem:[#allocation13 + $0x408] ss:$28 sps:$4 sm:$0xff]  }
 0x3d0   :  { %2678 = vmatprep.subr.bf16.mxu0 %v3734_v63  ;;  %2764 = vmatprep.subr.bf16.mxu1 %v3737_v0  ;;  %v3807_v63 = vld [vmem:[#allocation13 + $0x27c] ss:$28 sps:$4 sm:$0xff]  }
 0x3d1   :  { %v3808_v0 = vld [vmem:[#allocation13 + $0x600] ss:$28 sps:$4 sm:$0xff]  }
 0x3d3   :  { %2679 = vmatpush1.bf16.msra.mxu0 %v3732_v1  ;;  %2765 = vmatpush1.bf16.msra.mxu1 %v3735_v5  ;;  %v3805_v1 = vld [vmem:[#allocation13 + $0x278] ss:$28 sps:$4 sm:$0xff]   ;;  %v3809_v5 = vld [vmem:[#allocation13 + $0x440] ss:$28 sps:$4 sm:$0xff]  }
 0x3d4   :  { %2680 = vmatprep.subr.bf16.mxu0 %v3740_v6  ;;  %2766 = vmatprep.subr.bf16.mxu1 %v3743_v9  ;;  %v3812_v6 = vld [vmem:[#allocation13 + $0x2b4] ss:$28 sps:$4 sm:$0xff]  }
 0x3d5   :  { %v3813_v9 = vld [vmem:[#allocation13 + $0x638] ss:$28 sps:$4 sm:$0xff]  }
 0x3d7   :  { %2681 = vmatpush1.bf16.msra.mxu0 %v3738_v10  ;;  %2767 = vmatpush1.bf16.msra.mxu1 %v3741_v13  ;;  %v3810_v10 = vld [vmem:[#allocation13 + $0x2b0] ss:$28 sps:$4 sm:$0xff]   ;;  %v3814_v13 = vld [vmem:[#allocation13 + $0x478] ss:$28 sps:$4 sm:$0xff]  }
 0x3d8   :  { %2682 = vmatprep.subr.bf16.mxu0 %v3746_v15  ;;  %2768 = vmatprep.subr.bf16.mxu1 %v3749_v16  ;;  %v3817_v15 = vld [vmem:[#allocation13 + $0x2ec] ss:$28 sps:$4 sm:$0xff]  }
 0x3d9   :  { %v3818_v16 = vld [vmem:[#allocation13 + $0x670] ss:$28 sps:$4 sm:$0xff]  }
 0x3db   :  { %2683 = vmatpush1.bf16.msra.mxu0 %v3744_v17  ;;  %2769 = vmatpush1.bf16.msra.mxu1 %v3747_v20  ;;  %v3815_v17 = vld [vmem:[#allocation13 + $0x2e8] ss:$28 sps:$4 sm:$0xff]   ;;  %v3819_v20 = vld [vmem:[#allocation13 + $0x4b0] ss:$28 sps:$4 sm:$0xff]  }
 0x3dc   :  { %2781 = vmatprep.subr.bf16.mxu0 %v3752_v22  ;;  %3320 = vmatprep.subr.bf16.mxu1 %v3753_v23  ;;  %v3822_v22 = vld [vmem:[#allocation13 + $0x324] ss:$28 sps:$4 sm:$0xff]  }
 0x3dd   :  { %v3823_v23 = vld [vmem:[#allocation13 + $0x6a8] ss:$28 sps:$4 sm:$0xff]  }
 0x3de   :  { %2685 = vmatmul.mubr.bf16.vlgmr.msra.gmra.mrb[4].mxu0 %v4363_v7  ;;  %2771 = vmatmul.mubr.bf16.vlgmr.msra.gmra.mrb[12].mxu1 %v4363_v7 }
 0x3df   :  { %2782 = vmatpush1.bf16.msra.mxu0 %v3750_v24  ;;  %2813 = vmatprep.mubr.bf16.mxu0 %v4365_v8  ;;  %v3820_v24 = vld [vmem:[#allocation13 + $0x320] ss:$28 sps:$4 sm:$0xff]  }
 0x3e0   :  { %3321 = vmatpush3.bf16.msra.mxu1 %v3754_v25  ;;  %2899 = vmatprep.mubr.bf16.mxu1 %v4365_v8  ;;  %v3773_v8 = vld [vmem:[#allocation13 + $0x2b8] ss:$28 sps:$4 sm:$0xff]   ;;  %v3824_v25 = vld [vmem:[#allocation13 + $0x4e8] ss:$28 sps:$4 sm:$0xff]  }
 0x3e1   :  { %2783 = vmatprep.subr.bf16.mxu0 %v3757_v26  ;;  %3322 = vmatprep.subr.bf16.mxu1 %v3758_v37  ;;  %v3827_v26 = vld [vmem:[#allocation13 + $0x35c] ss:$28 sps:$4 sm:$0xff]  }
 0x3e2   :  { %v3828_v37 = vld [vmem:[#allocation13 + $0x6e0] ss:$28 sps:$4 sm:$0xff]  }
 0x3e3   :  { %2784 = vmatpush1.bf16.msra.mxu0 %v3755_v38  ;;  %v3825_v38 = vld [vmem:[#allocation13 + $0x358] ss:$28 sps:$4 sm:$0xff]  }
 0x3e4   :  { %3323 = vmatpush3.bf16.msra.mxu1 %v3759_v39  ;;  %2785 = vmatprep.subr.bf16.mxu0 %v3762_v40  ;;  %v3829_v39 = vld [vmem:[#allocation13 + $0x520] ss:$28 sps:$4 sm:$0xff]   ;;  %v3832_v40 = vld [vmem:[#allocation13 + $0x394] ss:$28 sps:$4 sm:$0xff]  }
 0x3e5   :  { %3324 = vmatprep.subr.bf16.mxu1 %v3763_v41  ;;  %v3830_v41 = vld [vmem:[#allocation13 + $0x390] ss:$28 sps:$4 sm:$0xff]  }
 0x3e7   :  { %2786 = vmatpush1.bf16.msra.mxu0 %v3760_v42  ;;  %v3835_v42 = vld [vmem:[#allocation13 + $0x3cc] ss:$28 sps:$4 sm:$0xff]  }
 0x3e8   :  { %3325 = vmatpush3.bf16.msra.mxu1 %v3764_v43  ;;  %2787 = vmatprep.subr.bf16.mxu0 %v3767_v44  ;;  %v3833_v43 = vld [vmem:[#allocation13 + $0x3c8] ss:$28 sps:$4 sm:$0xff]  }
 0x3e9   :  { %3326 = vmatprep.subr.bf16.mxu1 %v3768_v45  ;;  %v3838_v44 = vld [vmem:[#allocation13 + $0x404] ss:$28 sps:$4 sm:$0xff]  }
 0x3ea   :  { %v3836_v45 = vld [vmem:[#allocation13 + $0x400] ss:$28 sps:$4 sm:$0xff]  }
 0x3eb   :  { %2788 = vmatpush1.bf16.msra.mxu0 %v3765_v46  ;;  %v3841_v46 = vld [vmem:[#allocation13 + $0x43c] ss:$28 sps:$4 sm:$0xff]  }
 0x3ec   :  { %3327 = vmatpush3.bf16.msra.mxu1 %v3769_v29  ;;  %2789 = vmatprep.subr.bf16.mxu0 %v3772_v30  ;;  %v3839_v29 = vld [vmem:[#allocation13 + $0x438] ss:$28 sps:$4 sm:$0xff]  }
 0x3ed   :  { %3328 = vmatprep.subr.bf16.mxu1 %v3773_v8  ;;  %v3844_v30 = vld [vmem:[#allocation13 + $0x474] ss:$28 sps:$4 sm:$0xff]  }
 0x3ee   :  { %v3842_v8 = vld [vmem:[#allocation13 + $0x470] ss:$28 sps:$4 sm:$0xff]  }
 0x3ef   :  { %2790 = vmatpush1.bf16.msra.mxu0 %v3770_v47  ;;  %v3845_v47 = vld [vmem:[#allocation13 + $0x4a8] ss:$28 sps:$4 sm:$0xff]  }
 0x3f0   :  { %3329 = vmatpush3.bf16.msra.mxu1 %v3774_v48  ;;  %2791 = vmatprep.subr.bf16.mxu0 %v3777_v31  ;;  %v3850_v48 = vld [vmem:[#allocation13 + $0x4e4] ss:$28 sps:$4 sm:$0xff]   ;;  %v3853_v31 = vld [vmem:[#allocation13 + $0x51c] ss:$28 sps:$4 sm:$0xff]  }
 0x3f1   :  { %3330 = vmatprep.subr.bf16.mxu1 %v3778_v32  ;;  %v3851_v32 = vld [vmem:[#allocation13 + $0x518] ss:$28 sps:$4 sm:$0xff]  }
 0x3f3   :  { %2792 = vmatpush1.bf16.msra.mxu0 %v3775_v49  ;;  %v3856_v49 = vld [vmem:[#allocation13 + $0x554] ss:$28 sps:$4 sm:$0xff]  }
 0x3f4   :  { %3331 = vmatpush3.bf16.msra.mxu1 %v3779_v50  ;;  %2793 = vmatprep.subr.bf16.mxu0 %v3782_v51  ;;  %v3854_v50 = vld [vmem:[#allocation13 + $0x550] ss:$28 sps:$4 sm:$0xff]  }
 0x3f5   :  { %3332 = vmatprep.subr.bf16.mxu1 %v3783_v52  ;;  %v3859_v51 = vld [vmem:[#allocation13 + $0x58c] ss:$28 sps:$4 sm:$0xff]  }
 0x3f6   :  { %v3857_v52 = vld [vmem:[#allocation13 + $0x588] ss:$28 sps:$4 sm:$0xff]  }
 0x3f7   :  { %2794 = vmatpush1.bf16.msra.mxu0 %v3780_v53  ;;  %v3862_v53 = vld [vmem:[#allocation13 + $0x5c4] ss:$28 sps:$4 sm:$0xff]  }
 0x3f8   :  { %3333 = vmatpush3.bf16.msra.mxu1 %v3784_v54  ;;  %2795 = vmatprep.subr.bf16.mxu0 %v3787_v33  ;;  %v3860_v54 = vld [vmem:[#allocation13 + $0x5c0] ss:$28 sps:$4 sm:$0xff]  }
 0x3f9   :  { %3334 = vmatprep.subr.bf16.mxu1 %v3788_v55  ;;  %v3865_v33 = vld [vmem:[#allocation13 + $0x5fc] ss:$28 sps:$4 sm:$0xff]  }
 0x3fa   :  { %v3863_v55 = vld [vmem:[#allocation13 + $0x5f8] ss:$28 sps:$4 sm:$0xff]  }
 0x3fb   :  { %2796 = vmatpush1.bf16.msra.mxu0 %v3785_v56  ;;  %v3868_v56 = vld [vmem:[#allocation13 + $0x634] ss:$28 sps:$4 sm:$0xff]  }
 0x3fc   :  { %3335 = vmatpush3.bf16.msra.mxu1 %v3789_v2  ;;  %2797 = vmatprep.subr.bf16.mxu0 %v3792_v27  ;;  %v3866_v2 = vld [vmem:[#allocation13 + $0x630] ss:$28 sps:$4 sm:$0xff]  }
 0x3fd   :  { %3342 = vmatprep.subr.bf16.mxu1 %v3793_v34  ;;  %v3871_v27 = vld [vmem:[#allocation13 + $0x66c] ss:$28 sps:$4 sm:$0xff]  }
 0x3fe   :  { %v3869_v34 = vld [vmem:[#allocation13 + $0x668] ss:$28 sps:$4 sm:$0xff]  }
 0x3ff   :  { %2900 = vmatmul.mubr.bf16.vlgmr.msra.gmra.mrb[16].mxu1 %v4361_v4  ;;  %2798 = vmatpush1.bf16.msra.mxu0 %v3790_v57  ;;  %v3874_v57 = vld [vmem:[#allocation13 + $0x6a4] ss:$28 sps:$4 sm:$0xff]  }
 0x400   :  { %3343 = vmatpush3.bf16.msra.mxu1 %v3794_v58  ;;  %2940 = vmatprep.mubr.bf16.mxu1 %v4367_v11  ;;  %v3872_v58 = vld [vmem:[#allocation13 + $0x6a0] ss:$28 sps:$4 sm:$0xff]  }
 0x401   :  { %2799 = vmatprep.subr.bf16.mxu0 %v3797_v35  ;;  %3344 = vmatprep.subr.bf16.mxu1 %v3798_v59  ;;  %v3877_v35 = vld [vmem:[#allocation13 + $0x6dc] ss:$28 sps:$4 sm:$0xff]  }
 0x402   :  { %v3875_v59 = vld [vmem:[#allocation13 + $0x6d8] ss:$28 sps:$4 sm:$0xff]  }
 0x403   :  { %2800 = vmatpush1.bf16.msra.mxu0 %v3795_v60  ;;  %v4388_v60 = vld [vmem:[%s4426_s10] sm:$0xff]  ;;  %s4122_s10 = smov [#allocation14]  }
 0x404   :  { %3345 = vmatpush3.bf16.msra.mxu1 %v3799_v3  ;;  %2801 = vmatprep.subr.bf16.mxu0 %v3802_v28  ;;  %v1425_v3 = vrot.slane %v4388_v60, %v4285_v19  ;;  %v1433_v28 = vrot.slane %v4388_v60, %v4337_v12  ;;  %s2982_s13 = sshll.u32 %s4122_s10, 4  ;;  %s2983_s13 = int_to_ptr.vmem [resolvable:$true] %s2982_s13 }
 0x405   :  { %3346 = vmatprep.subr.bf16.mxu1 %v3803_v36  ;;  %v1429_v36 = vrot.slane %v4388_v60, %v4288_v21  ;;  %s4072_s14 = scalar_lea.vmem %s2983_s13, 1792  ;;  %p4077_p1 = scmp.lt.s32.totalorder %s2983_s13, %s2983_s13 }
 0x406   :  { %p4073_p0 = scmp.ne.s32.totalorder %s2983_s13, %s4072_s14  ;;  %p4078_p2 = scmp.lt.s32.totalorder %s4072_s14, %s4072_s14 }
 0x407   :  { %2802 = vmatpush1.bf16.msra.mxu0 %v3800_v61  ;;  %v1437_v61 = vrot.slane %v4388_v60, %v4343_v14 }
 0x408   :  { %3347 = vmatpush3.bf16.msra.mxu1 %v3804_v62  ;;  %2803 = vmatprep.subr.bf16.mxu0 %v3807_v63  ;;  %p4079_p3 = por %p4078_p2, %p4077_p1 }
 0x409   :  { %3348 = vmatprep.subr.bf16.mxu1 %v3808_v0 }
 0x40a   :  { %p4080_p4 = pnand %p4079_p3, %p4073_p0 }
 0x40b   :  { %2804 = vmatpush1.bf16.msra.mxu0 %v3805_v1 }
 0x40c   :  { %3349 = vmatpush3.bf16.msra.mxu1 %v3809_v5  ;;  %2805 = vmatprep.subr.bf16.mxu0 %v3812_v6 }
 0x40d   :  { %3350 = vmatprep.subr.bf16.mxu1 %v3813_v9 }
 0x40f   :  { %2806 = vmatpush1.bf16.msra.mxu0 %v3810_v10 }
 0x410   :  { %3351 = vmatpush3.bf16.msra.mxu1 %v3814_v13  ;;  %2807 = vmatprep.subr.bf16.mxu0 %v3817_v15 }
 0x411   :  { %3352 = vmatprep.subr.bf16.mxu1 %v3818_v16 }
 0x413   :  { %2808 = vmatpush1.bf16.msra.mxu0 %v3815_v17 }
 0x414   :  { %3353 = vmatpush3.bf16.msra.mxu1 %v3819_v20  ;;  %2809 = vmatprep.subr.bf16.mxu0 %v3822_v22 }
 0x415   :  { %3354 = vmatprep.subr.bf16.mxu1 %v3823_v23 }
 0x417   :  { %2810 = vmatpush1.bf16.msra.mxu0 %v3820_v24 }
 0x418   :  { %3355 = vmatpush3.bf16.msra.mxu1 %v3824_v25  ;;  %2811 = vmatprep.subr.bf16.mxu0 %v3827_v26 }
 0x419   :  { %3356 = vmatprep.subr.bf16.mxu1 %v3828_v37 }
 0x41b   :  { %2812 = vmatpush1.bf16.msra.mxu0 %v3825_v38 }
 0x41c   :  { %3357 = vmatpush3.bf16.msra.mxu1 %v3829_v39  ;;  %2824 = vmatprep.subr.bf16.mxu0 %v3832_v40 }
 0x41e   :  { %2814 = vmatmul.mubr.bf16.vlgmr.msra.gmra.mrb[8].mxu0 %v4361_v4  ;;  %v3847_v4 = vld [vmem:[#allocation13 + $0x4ac] ss:$28 sps:$4 sm:$0xff]  }
 0x41f   :  { %2941 = vmatmul.mubr.bf16.vlgmr.msra.gmra.mrb[20].mxu1 %v4363_v7  ;;  %2825 = vmatpush1.bf16.msra.mxu0 %v3830_v41 }
 0x420   :  { %2856 = vmatprep.mubr.bf16.mxu0 %v4367_v11  ;;  %2826 = vmatprep.subr.bf16.mxu0 %v3835_v42  ;;  %v3848_v11 = vld [vmem:[#allocation13 + $0x4e0] ss:$28 sps:$4 sm:$0xff]  }
 0x423   :  { %2827 = vmatpush1.bf16.msra.mxu0 %v3833_v43 }
 0x424   :  { %2828 = vmatprep.subr.bf16.mxu0 %v3838_v44  ;;  %v1448_v44 = vsub.s32 6, %v4282_v18 }
 0x427   :  { %2829 = vmatpush1.bf16.msra.mxu0 %v3836_v45  ;;  %v1449_v45 = vrot.slane %v4388_v60, %v1448_v44 }
 0x428   :  { %2830 = vmatprep.subr.bf16.mxu0 %v3841_v46 }
 0x42b   :  { %2831 = vmatpush1.bf16.msra.mxu0 %v3839_v29 }
 0x42c   :  { %2832 = vmatprep.subr.bf16.mxu0 %v3844_v30 }
 0x42f   :  { %2833 = vmatpush1.bf16.msra.mxu0 %v3842_v8 }
 0x430   :  { %2834 = vmatprep.subr.bf16.mxu0 %v3847_v4 }
 0x433   :  { %2835 = vmatpush1.bf16.msra.mxu0 %v3845_v47 }
 0x434   :  { %2836 = vmatprep.subr.bf16.mxu0 %v3850_v48 }
 0x437   :  { %2837 = vmatpush1.bf16.msra.mxu0 %v3848_v11 }
 0x438   :  { %2838 = vmatprep.subr.bf16.mxu0 %v3853_v31 }
 0x43b   :  { %2839 = vmatpush1.bf16.msra.mxu0 %v3851_v32 }
 0x43c   :  { %2840 = vmatprep.subr.bf16.mxu0 %v3856_v49 }
 0x43f   :  { %2841 = vmatpush1.bf16.msra.mxu0 %v3854_v50 }
 0x440   :  { %2842 = vmatprep.subr.bf16.mxu0 %v3859_v51  ;;  %v1440_v51 = vsub.s32 4, %v4282_v18 }
 0x443   :  { %2843 = vmatpush1.bf16.msra.mxu0 %v3857_v52  ;;  %v1444_v52 = vsub.s32 5, %v4282_v18 }
 0x444   :  { %2844 = vmatprep.subr.bf16.mxu0 %v3862_v53  ;;  %v1441_v53 = vrot.slane %v4388_v60, %v1440_v51 }
 0x447   :  { %2845 = vmatpush1.bf16.msra.mxu0 %v3860_v54  ;;  %v1445_v54 = vrot.slane %v4388_v60, %v1444_v52 }
 0x448   :  { %2846 = vmatprep.subr.bf16.mxu0 %v3865_v33 }
 0x44b   :  { %2847 = vmatpush1.bf16.msra.mxu0 %v3863_v55 }
 0x44c   :  { %2848 = vmatprep.subr.bf16.mxu0 %v3868_v56 }
 0x44f   :  { %2849 = vmatpush1.bf16.msra.mxu0 %v3866_v2 }
 0x450   :  { %2850 = vmatprep.subr.bf16.mxu0 %v3871_v27 }
 0x453   :  { %2851 = vmatpush1.bf16.msra.mxu0 %v3869_v34 }
 0x454   :  { %2852 = vmatprep.subr.bf16.mxu0 %v3874_v57 }
 0x457   :  { %2853 = vmatpush1.bf16.msra.mxu0 %v3872_v58 }
 0x458   :  { %2854 = vmatprep.subr.bf16.mxu0 %v3877_v35 }
 0x45b   :  { %2855 = vmatpush1.bf16.msra.mxu0 %v3875_v59 }
 0x45e   :  { %2857 = vmatmul.mubr.bf16.vlgmr.msra.gmra.mrb[8].mxu0 %v4363_v7 }
 0x4b1   :  { %v2686_v62 = vpop.f32.mrb[4].mxu0  ;;  %v2772_v63 = vpop.f32.mrb[12].mxu1 }
 0x4b2   :  { %v3384_v7 = vadd.f32 %v2686_v62, %v1425_v3  ;;  %v3388_v0 = vadd.f32 %v2772_v63, %v1433_v28  ;;  %v2688_v1 = vpop.f32.mrb[5].mxu0  ;;  %v2774_v5 = vpop.f32.mrb[13].mxu1 }
 0x4b3   :  { %v3385_v6 = vadd.f32 %v2688_v1, %v1429_v36  ;;  %v3389_v9 = vadd.f32 %v2774_v5, %v1437_v61  ;;  %v2690_v10 = vpop.f32.mrb[6].mxu0  ;;  %v2776_v13 = vpop.f32.mrb[14].mxu1 }
 0x4b4   :  { %3890 = vtanh.f32 %v3384_v7  ;;  %v3386_v19 = vadd.f32 %v2690_v10, %v1425_v3  ;;  %v2692_v15 = vpop.f32.mrb[7].mxu0  ;;  %v2778_v12 = vpop.f32.mrb[15].mxu1  ;;  %v3390_v16 = vadd.f32 %v2776_v13, %v1433_v28 }
 0x4b5   :  { %3892 = vtanh.f32 %v3388_v0  ;;  %v3387_v21 = vadd.f32 %v2692_v15, %v1429_v36  ;;  %v3391_v14 = vadd.f32 %v2778_v12, %v1437_v61 }
 0x4b6   :  { %3894 = vtanh.f32 %v3385_v6 }
 0x4b7   :  { %3896 = vtanh.f32 %v3389_v9 }
 0x4b8   :  { %3898 = vtanh.f32 %v3386_v19 }
 0x4b9   :  { %3900 = vtanh.f32 %v3390_v16 }
 0x4ba   :  { %3902 = vtanh.f32 %v3387_v21 }
 0x4bb   :  { %3904 = vtanh.f32 %v3391_v14 }
 0x4be   :  { %v3891_v17 = vpop.eup %3890 }
 0x4bf   :  { %v3893_v20 = vpop.eup %3892  ;;  %2963 = vst [vmem:[#allocation14] sm:$0xff] %v3891_v17 }
 0x4c0   :  { %v3895_v22 = vpop.eup %3894  ;;  %2965 = vst [vmem:[#allocation14 + $0x10] sm:$0xff] %v3893_v20 }
 0x4c1   :  { %v3897_v23 = vpop.eup %3896  ;;  %2964 = vst [vmem:[#allocation14 + $0x8] sm:$0xff] %v3895_v22 }
 0x4c2   :  { %v3899_v24 = vpop.eup %3898  ;;  %2966 = vst [vmem:[#allocation14 + $0x18] sm:$0xff] %v3897_v23 }
 0x4c3   :  { %v3901_v25 = vpop.eup %3900  ;;  %2970 = vst [vmem:[#allocation14 + $0x38] sm:$0xff] %v3899_v24 }
 0x4c4   :  { %v3903_v26 = vpop.eup %3902  ;;  %2972 = vst [vmem:[#allocation14 + $0x48] sm:$0xff] %v3901_v25 }
 0x4c5   :  { %v3905_v37 = vpop.eup %3904  ;;  %2971 = vst [vmem:[#allocation14 + $0x40] sm:$0xff] %v3903_v26 }
 0x4c6   :  { %2973 = vst [vmem:[#allocation14 + $0x50] sm:$0xff] %v3905_v37 }
 0x4d2   :  { %v3336_v38 = vpop.f32.mrb[16].mxu1 }
 0x4d3   :  { %v3337_v39 = vpop.f32.mrb[17].mxu1 }
 0x4d4   :  { %v3338_v40 = vadd.f32 %v3337_v39, %v3336_v38  ;;  %v3339_v41 = vpop.f32.mrb[18].mxu1 }
 0x4d5   :  { %v3340_v42 = vpop.f32.mrb[19].mxu1 }
 0x4d6   :  { %v3341_v43 = vadd.f32 %v3340_v42, %v3339_v41  ;;  %v2902_v30 = vadd.f32 %v3338_v40, %v1449_v45 }
 0x4d8   :  { %v2905_v48 = vadd.f32 %v3341_v43, %v1449_v45 }
 0x4f2   :  { %v3358_v46 = vpop.f32.mrb[20].mxu1 }
 0x4f3   :  { %v3359_v29 = vpop.f32.mrb[21].mxu1 }
 0x4f4   :  { %v3360_v8 = vadd.f32 %v3359_v29, %v3358_v46  ;;  %v3361_v4 = vpop.f32.mrb[22].mxu1 }
 0x4f5   :  { %v3362_v47 = vpop.f32.mrb[23].mxu1 }
 0x4f6   :  { %v2943_v11 = vadd.f32 %v3360_v8, %v2902_v30  ;;  %v3363_v31 = vadd.f32 %v3362_v47, %v3361_v4 }
 0x4f8   :  { %3906 = vtanh.f32 %v2943_v11  ;;  %v2946_v32 = vadd.f32 %v3363_v31, %v2905_v48 }
 0x4fa   :  { %3908 = vtanh.f32 %v2946_v32 }
 0x502   :  { %v3907_v49 = vpop.eup %3906 }
 0x503   :  { %2969 = vst [vmem:[#allocation14 + $0x30] sm:$0xff] %v3907_v49 }
 0x504   :  { %v3909_v50 = vpop.eup %3908 }
 0x505   :  { %2976 = vst [vmem:[#allocation14 + $0x68] sm:$0xff] %v3909_v50 }
 0x531   :  { %v2858_v33 = vpop.f32.mrb[8].mxu0 }
 0x532   :  { %v3392_v55 = vadd.f32 %v2858_v33, %v1441_v53  ;;  %v2860_v56 = vpop.f32.mrb[9].mxu0 }
 0x533   :  { %v3393_v2 = vadd.f32 %v2860_v56, %v1445_v54  ;;  %v2862_v27 = vpop.f32.mrb[10].mxu0 }
 0x534   :  { %3910 = vtanh.f32 %v3392_v55  ;;  %v3394_v34 = vadd.f32 %v2862_v27, %v1441_v53  ;;  %v2864_v57 = vpop.f32.mrb[11].mxu0 }
 0x535   :  { %3912 = vtanh.f32 %v3393_v2  ;;  %v3395_v58 = vadd.f32 %v2864_v57, %v1445_v54 }
 0x536   :  { %3914 = vtanh.f32 %v3394_v34 }
 0x537   :  { %3916 = vtanh.f32 %v3395_v58 }
 0x53e   :  { %v3911_v35 = vpop.eup %3910 }
 0x53f   :  { %v3913_v18 = vpop.eup %3912  ;;  %2967 = vst [vmem:[#allocation14 + $0x20] sm:$0xff] %v3911_v35 }
 0x540   :  { %v3915_v59 = vpop.eup %3914  ;;  %2968 = vst [vmem:[#allocation14 + $0x28] sm:$0xff] %v3913_v18 }
 0x541   :  { %v3917_v60 = vpop.eup %3916  ;;  %2974 = vst [vmem:[#allocation14 + $0x58] sm:$0xff] %v3915_v59 }
 0x542   :  { %2975 = vst [vmem:[#allocation14 + $0x60] sm:$0xff] %v3917_v60 }
 0x543   :  { %4083 = shalt.err (!%p4080_p4)
}
 0x544   :  { %s4084_s27 = scalar_lea.hbm %s4427_s11, 1792 }
 0x545   :  { %p4085_p5 = scmp.ne.s32.totalorder %s4427_s11, %s4084_s27  ;;  %p4088_p6 = scmp.lt.u32.totalorder %s4084_s27, %s4427_s11 }
 0x547   :  { %p4090_p7 = pnand %p4088_p6, %p4085_p5 }
 0x549   :  { %4093 = shalt.err (!%p4090_p7)
}
 0x54a   :  { %s4123_s19 = smov 896   ;;  %s4124_s3 = smov 56  }
 0x54b   :  { %2988 = dma.vmem_to_hbm [thread:$0]  %s2983_s13, 1792, %s4427_s11, [#allocation4], %s4123_s19, %s4123_s19, %s4124_s3  }
 0x54c   :  { %4102 = dma.done.wait [#allocation4], 1792  }
 0x54d   :  { %4103 = vsyncadd [#allocation4], 4294965504 }
 0x54e   :  { %2992 = vsyncpa [#allocation3], 1 }
 0x54f   :  { %2993 = vsyncpa [#allocation6], 1 }
 0x550   :  { %2994 = vsyncpa [#allocation9], 1 }
 0x551   :  { %2995 = vsyncpa [#allocation12], 1 }
 0x552   :  { %2996 = vsyncpa [#allocation4], 1 }

</bundles_post_ra>
